<compile_context>
chip_gen: v7x
topology: tpu7x:2x2x1
jax: 0.10.0
libtpu: 0.0.40
codegen_flags: <defaults>
</compile_context>

<pallas_src>
import functools

import jax
import jax.numpy as jnp
from jax.experimental import pallas as pl
from jax.experimental.pallas import tpu as pltpu


# ----------------------------- math helpers ----------------------------------

def _erf_kernel(x):
    # Abramowitz & Stegun 7.1.26 polynomial (|err| < 1.5e-7); elementwise only,
    # with the divide routed to the EUP (free slot) per the perf review.
    a1, a2, a3, a4, a5 = 0.254829592, -0.284496736, 1.421413741, -1.453152027, 1.061405429
    p = 0.3275911
    s = jnp.where(x >= 0.0, 1.0, -1.0)
    ax = jnp.abs(x)
    t = pl.reciprocal(1.0 + p * ax, approx=True)
    poly = ((((a5 * t + a4) * t + a3) * t + a2) * t + a1) * t
    return s * (1.0 - poly * jnp.exp(-ax * ax))


def _gelu_kernel(x):
    # torch nn.GELU() default (exact / erf form)
    return x * 0.5 * (1.0 + _erf_kernel(x * 0.7071067811865476))


def _layernorm(h, g, b, eps):
    mu = jnp.mean(h, axis=-1, keepdims=True)
    var = jnp.mean(jnp.square(h - mu), axis=-1, keepdims=True)
    return (h - mu) * jax.lax.rsqrt(var + eps) * g + b


# ----------------------------------------------------------------- kernel ----

def gpt_decoder_layer_kernel(x_ref, ln1g_ref, ln1b_ref,
                             wqkv_ref, bqkv_ref, wo_ref, bo_ref,
                             ln2g_ref, ln2b_ref,
                             w1_ref, b1_ref, w2_ref, b2_ref,
                             out_ref, ln2_scr, ctx_scr,
                             *, num_heads, dim_head, eps, inv_scale):
    f = pl.program_id(1)           # FFN-chunk index (reduction axis, "arbitrary")
    S, D = x_ref.shape
    H, Dh = num_heads, dim_head
    bf16 = jnp.bfloat16

    # ---- attention + residual + LN2: once per batch block (f == 0) ----------
    @pl.when(f == 0)
    def _():
        x = x_ref[...]                                                 # (S, D) f32
        ln_x = _layernorm(x, ln1g_ref[...], ln1b_ref[...], eps).astype(bf16)

        # Fused QKV projection: single full-width (S,D)x(D,3D) MXU matmul.
        qkv = jnp.dot(ln_x, wqkv_ref[...],
                      preferred_element_type=jnp.float32) + bqkv_ref[...]   # (S, 3D)
        q = (qkv[:, :D] * inv_scale).astype(bf16)        # fold 1/sqrt(Dh) into q
        k = qkv[:, D:2 * D].astype(bf16)
        v = qkv[:, 2 * D:].astype(bf16)

        # Attention core (inherently per-head: contraction width is Dh). Context
        # is written back lane-dense into ctx_scr (S, D) so the output projection
        # is a single full-width matmul.
        for h in range(H):
            sl = slice(h * Dh, (h + 1) * Dh)
            s = jnp.einsum('qd,kd->qk', q[:, sl], k[:, sl],
                           preferred_element_type=jnp.float32)         # (S, S) f32
            # TODO(synk): apply causal attention_mask to `s` here if ever provided.
            s_max = jnp.max(s, axis=-1, keepdims=True)
            e = jnp.exp(s - s_max)
            denom = jnp.sum(e, axis=-1, keepdims=True)
            probs = (e * pl.reciprocal(denom, approx=True)).astype(bf16)
            ctx_scr[:, sl] = jnp.dot(probs, v[:, sl],
                                     preferred_element_type=jnp.float32).astype(bf16)

        # Fused output projection: one (S,D)x(D,D) matmul, head-sum lives in K.
        attn = jnp.dot(ctx_scr[...], wo_ref[...],
                       preferred_element_type=jnp.float32) + bo_ref[...]
        residual = attn + x                               # hidden_dropout = identity
        ln2_scr[...] = _layernorm(residual, ln2g_ref[...], ln2b_ref[...],
                                  eps).astype(bf16)
        out_ref[...] = residual + b2_ref[...]             # init accumulator; b2 added once

    # ---- FFN chunk over the F axis, accumulated into the resident output ----
    hid = jnp.dot(ln2_scr[...], w1_ref[...],
                  preferred_element_type=jnp.float32) + b1_ref[pl.ds(f, 1), :]  # (S, tf)
    hid = _gelu_kernel(hid)                               # FFN dropout = identity
    out_ref[...] += jnp.dot(hid.astype(bf16), w2_ref[...],
                            preferred_element_type=jnp.float32)                 # (S, D)


# ---------------------------------------------------------------- wrapper ----

def gpt_decoder_layer_forward(x, params, *, num_heads, dim_head, eps, f_block=512):
    B, S, D = x.shape
    H, Dh = num_heads, dim_head
    assert H * Dh == D
    F = params['w1'].shape[-1]
    tf = min(f_block, F)
    assert F % tf == 0
    nF = F // tf
    bf16 = jnp.bfloat16
    inv_scale = 1.0 / (float(dim_head) ** 0.5)

    # Fused QKV weight (one full-width matmul) + plain (D, D) output projection.
    wqkv = jnp.concatenate([params['wq'], params['wk'], params['wv']],
                           axis=1).astype(bf16)                         # (D, 3D)
    bqkv = jnp.concatenate([params['bq'], params['bk'],
                            params['bv']]).reshape(1, 3 * D)            # f32
    wo = params['wo'].astype(bf16)
    bo = params['bo'].reshape(1, D)
    ln1_g = params['ln1_g'].reshape(1, D)
    ln1_b = params['ln1_b'].reshape(1, D)
    ln2_g = params['ln2_g'].reshape(1, D)
    ln2_b = params['ln2_b'].reshape(1, D)
    w1 = params['w1'].astype(bf16)
    b1 = params['b1'].reshape(nF, tf)            # resident in VMEM, indexed in-kernel
    w2 = params['w2'].astype(bf16)
    b2 = params['b2'].reshape(1, D)

    const2 = lambda b, f: (0, 0)
    in_specs = [
        pl.BlockSpec((None, S, D), lambda b, f: (b, 0, 0)),               # x
        pl.BlockSpec((1, D), const2), pl.BlockSpec((1, D), const2),       # ln1 g, b
        pl.BlockSpec((D, 3 * D), const2),                                 # W_qkv
        pl.BlockSpec((1, 3 * D), const2),                                 # b_qkv
        pl.BlockSpec((D, D), const2), pl.BlockSpec((1, D), const2),       # Wo, bo
        pl.BlockSpec((1, D), const2), pl.BlockSpec((1, D), const2),       # ln2 g, b
        pl.BlockSpec((D, tf), lambda b, f: (0, f)),                       # W1 chunk
        pl.BlockSpec((nF, tf), const2),                                   # b1 (resident)
        pl.BlockSpec((tf, D), lambda b, f: (f, 0)),                       # W2 chunk
        pl.BlockSpec((1, D), const2),                                     # b2
    ]
    out_specs = pl.BlockSpec((None, S, D), lambda b, f: (b, 0, 0))

    kernel = functools.partial(gpt_decoder_layer_kernel, num_heads=H, dim_head=Dh,
                               eps=eps, inv_scale=inv_scale)

    return pl.pallas_call(
        kernel,
        out_shape=jax.ShapeDtypeStruct((B, S, D), jnp.float32),
        grid_spec=pltpu.PrefetchScalarGridSpec(
            num_scalar_prefetch=0,
            grid=(B, nF),
            in_specs=in_specs,
            out_specs=out_specs,
            scratch_shapes=[pltpu.VMEM((S, D), bf16),    # LN2(residual), kept across F chunks
                            pltpu.VMEM((S, D), bf16)],   # lane-dense attention context
        ),
        compiler_params=pltpu.CompilerParams(
            dimension_semantics=("parallel", "arbitrary"),   # batch -> cores; F -> sequential
            vmem_limit_bytes=32 * 1024 * 1024,
        ),
    )(x, ln1_g, ln1_b, wqkv, bqkv, wo, bo, ln2_g, ln2_b, w1, b1, w2, b2)


# -------------------------------------------------------- pure-JAX reference --

def ref_forward(x, params, *, num_heads, dim_head, eps):
    B, S, D = x.shape
    H, Dh = num_heads, dim_head
    scale = float(dim_head) ** 0.5
    ln_x = _layernorm(x, params['ln1_g'], params['ln1_b'], eps)
    q = ln_x @ params['wq'] + params['bq']
    k = ln_x @ params['wk'] + params['bk']
    v = ln_x @ params['wv'] + params['bv']

    def split(t):
        return t.reshape(B, S, H, Dh).transpose(0, 2, 1, 3)

    qh, kh, vh = split(q), split(k), split(v)
    scores = jnp.einsum('bhqd,bhkd->bhqk', qh, kh) / scale
    scores = scores - jnp.max(scores, axis=-1, keepdims=True)
    e = jnp.exp(scores)
    probs = e / jnp.sum(e, axis=-1, keepdims=True)
    ctx = jnp.einsum('bhqk,bhkd->bhqd', probs, vh).transpose(0, 2, 1, 3).reshape(B, S, D)
    attn = ctx @ params['wo'] + params['bo']
    residual = attn + x
    ln2 = _layernorm(residual, params['ln2_g'], params['ln2_b'], eps)
    hid = ln2 @ params['w1'] + params['b1']
    hid = hid * 0.5 * (1.0 + jax.lax.erf(hid * 0.7071067811865476))   # exact GELU
    return hid @ params['w2'] + params['b2'] + residual


# ------------------------------------------------------------------- main ----

if __name__ == "__main__":
    # Small, lane-dense demo config consistent with GPTDecoderLayer's forward:
    # dim_head = dim_model / num_heads; dim_ffn = 4 * dim_model.
    B, S = 2, 16                 # batch, seq_len
    H, DH = 2, 128               # num_attention_heads, dim_head (lane-aligned)
    D = H * DH                   # dim_model = 256
    F = 4 * D                    # dim_ffn = 1024 (streamed in 512-wide chunks)
    EPS = 0.02                   # layer_norm_eps (module default)

    key = jax.random.PRNGKey(0)
    ks = jax.random.split(key, 13)

    def init_w(k, shape, scale=0.02):
        w = scale * jax.random.normal(k, shape, jnp.float32)
        # Round-trip through bf16 so the kernel (bf16 weights) and the f32
        # reference see numerically identical parameters.
        return w.astype(jnp.bfloat16).astype(jnp.float32)

    params = {
        'ln1_g': jnp.ones((D,), jnp.float32), 'ln1_b': jnp.zeros((D,), jnp.float32),
        'wq': init_w(ks[0], (D, D)), 'bq': init_w(ks[1], (D,)),
        'wk': init_w(ks[2], (D, D)), 'bk': init_w(ks[3], (D,)),
        'wv': init_w(ks[4], (D, D)), 'bv': init_w(ks[5], (D,)),
        'wo': init_w(ks[6], (D, D)), 'bo': init_w(ks[7], (D,)),
        'ln2_g': jnp.ones((D,), jnp.float32), 'ln2_b': jnp.zeros((D,), jnp.float32),
        'w1': init_w(ks[8], (D, F)), 'b1': init_w(ks[9], (F,)),
        'w2': init_w(ks[10], (F, D)), 'b2': init_w(ks[11], (D,)),
    }
    x = jax.random.normal(ks[12], (B, S, D), jnp.float32)

    out = gpt_decoder_layer_forward(x, params, num_heads=H, dim_head=DH, eps=EPS)
    jax.block_until_ready(out)

    ref = ref_forward(x, params, num_heads=H, dim_head=DH, eps=EPS)
    assert out.shape == (B, S, D)
    err = float(jnp.max(jnp.abs(out - ref)))
    # Tolerance covers bf16 matmul operands + approx (EUP) reciprocals.
    assert err < 2e-2, f"max abs err {err}"
    print("KERNEL_OK")
</pallas_src>

<mosaic_0001>
module attributes {stable_mosaic.version = 11 : i64} {
  func.func @gpt_decoder_layer_kernel(%arg0: i32, %arg1: i32, %arg2: memref<1x16x256xf32, #tpu.memory_space<vmem>>, %arg3: memref<1x256xf32, #tpu.memory_space<vmem>>, %arg4: memref<1x256xf32, #tpu.memory_space<vmem>>, %arg5: memref<256x768xbf16, #tpu.memory_space<vmem>>, %arg6: memref<1x768xf32, #tpu.memory_space<vmem>>, %arg7: memref<256x256xbf16, #tpu.memory_space<vmem>>, %arg8: memref<1x256xf32, #tpu.memory_space<vmem>>, %arg9: memref<1x256xf32, #tpu.memory_space<vmem>>, %arg10: memref<1x256xf32, #tpu.memory_space<vmem>>, %arg11: memref<256x512xbf16, #tpu.memory_space<vmem>>, %arg12: memref<2x512xf32, #tpu.memory_space<vmem>>, %arg13: memref<512x256xbf16, #tpu.memory_space<vmem>>, %arg14: memref<1x256xf32, #tpu.memory_space<vmem>>, %arg15: memref<1x16x256xf32, #tpu.memory_space<vmem>>, %arg16: memref<16x256xbf16, #tpu.memory_space<vmem>>, %arg17: memref<16x256xbf16, #tpu.memory_space<vmem>>) attributes {dimension_semantics = [#tpu.dimension_semantics<parallel>, #tpu.dimension_semantics<arbitrary>], iteration_bounds = array<i64: 2, 2>, scalar_prefetch = 0 : i64, scratch_operands = 2 : i64, tpu.core_type = #tpu.core_type<tc>, window_params = [{transform_indices = @transform_0, window_bounds = array<i64: 1, 16, 256>}, {pipeline_mode = #tpu.pipeline_mode<synchronous>, transform_indices = @transform_1, window_bounds = array<i64: 1, 256>}, {pipeline_mode = #tpu.pipeline_mode<synchronous>, transform_indices = @transform_2, window_bounds = array<i64: 1, 256>}, {pipeline_mode = #tpu.pipeline_mode<synchronous>, transform_indices = @transform_3, window_bounds = array<i64: 256, 768>}, {pipeline_mode = #tpu.pipeline_mode<synchronous>, transform_indices = @transform_4, window_bounds = array<i64: 1, 768>}, {pipeline_mode = #tpu.pipeline_mode<synchronous>, transform_indices = @transform_5, window_bounds = array<i64: 256, 256>}, {pipeline_mode = #tpu.pipeline_mode<synchronous>, transform_indices = @transform_6, window_bounds = array<i64: 1, 256>}, {pipeline_mode = #tpu.pipeline_mode<synchronous>, transform_indices = @transform_7, window_bounds = array<i64: 1, 256>}, {pipeline_mode = #tpu.pipeline_mode<synchronous>, transform_indices = @transform_8, window_bounds = array<i64: 1, 256>}, {transform_indices = @transform_9, window_bounds = array<i64: 256, 512>}, {pipeline_mode = #tpu.pipeline_mode<synchronous>, transform_indices = @transform_10, window_bounds = array<i64: 2, 512>}, {transform_indices = @transform_11, window_bounds = array<i64: 512, 256>}, {pipeline_mode = #tpu.pipeline_mode<synchronous>, transform_indices = @transform_12, window_bounds = array<i64: 1, 256>}, {transform_indices = @transform_13, window_bounds = array<i64: 1, 16, 256>}]} {
    %c0_i32 = arith.constant 0 : i32
    %0 = arith.cmpi eq, %arg1, %c0_i32 : i32
    %1 = arith.extui %0 : i1 to i32
    %c0_i32_0 = arith.constant 0 : i32
    %2 = arith.cmpi ne, %1, %c0_i32_0 : i32
    scf.if %2 {
      %c0_29 = arith.constant 0 : index
      %c0_30 = arith.constant 0 : index
      %c0_31 = arith.constant 0 : index
      %59 = vector.load %arg2[%c0_29, %c0_30, %c0_31] : memref<1x16x256xf32, #tpu.memory_space<vmem>>, vector<1x16x256xf32>
      %60 = vector.shape_cast %59 : vector<1x16x256xf32> to vector<16x256xf32>
      %c0_32 = arith.constant 0 : index
      %c0_33 = arith.constant 0 : index
      %61 = vector.load %arg3[%c0_32, %c0_33] : memref<1x256xf32, #tpu.memory_space<vmem>>, vector<1x256xf32>
      %c0_34 = arith.constant 0 : index
      %c0_35 = arith.constant 0 : index
      %62 = vector.load %arg4[%c0_34, %c0_35] : memref<1x256xf32, #tpu.memory_space<vmem>>, vector<1x256xf32>
      %cst_36 = arith.constant dense<0.000000e+00> : vector<16xf32>
      %63 = vector.multi_reduction <add>, %60, %cst_36 [1] : vector<16x256xf32> to vector<16xf32>
      %64 = vector.shape_cast %63 : vector<16xf32> to vector<16x1xf32>
      %cst_37 = arith.constant 2.560000e+02 : f32
      %65 = vector.broadcast %cst_37 : f32 to vector<16x1xf32>
      %66 = arith.divf %64, %65 : vector<16x1xf32>
      %67 = vector.broadcast %66 : vector<16x1xf32> to vector<16x256xf32>
      %68 = arith.subf %60, %67 : vector<16x256xf32>
      %69 = arith.mulf %68, %68 : vector<16x256xf32>
      %cst_38 = arith.constant dense<0.000000e+00> : vector<16xf32>
      %70 = vector.multi_reduction <add>, %69, %cst_38 [1] : vector<16x256xf32> to vector<16xf32>
      %71 = vector.shape_cast %70 : vector<16xf32> to vector<16x1xf32>
      %cst_39 = arith.constant 2.560000e+02 : f32
      %72 = vector.broadcast %cst_39 : f32 to vector<16x1xf32>
      %73 = arith.divf %71, %72 : vector<16x1xf32>
      %74 = vector.broadcast %66 : vector<16x1xf32> to vector<16x256xf32>
      %75 = arith.subf %60, %74 : vector<16x256xf32>
      %cst_40 = arith.constant 2.000000e-02 : f32
      %76 = vector.broadcast %cst_40 : f32 to vector<16x1xf32>
      %77 = arith.addf %73, %76 : vector<16x1xf32>
      %78 = math.rsqrt %77 : vector<16x1xf32>
      %79 = vector.broadcast %78 : vector<16x1xf32> to vector<16x256xf32>
      %80 = arith.mulf %75, %79 : vector<16x256xf32>
      %81 = vector.broadcast %61 : vector<1x256xf32> to vector<16x256xf32>
      %82 = arith.mulf %80, %81 : vector<16x256xf32>
      %83 = vector.broadcast %62 : vector<1x256xf32> to vector<16x256xf32>
      %84 = arith.addf %82, %83 : vector<16x256xf32>
      %85 = arith.truncf %84 : vector<16x256xf32> to vector<16x256xbf16>
      %c0_41 = arith.constant 0 : index
      %c0_42 = arith.constant 0 : index
      %86 = vector.load %arg5[%c0_41, %c0_42] : memref<256x768xbf16, #tpu.memory_space<vmem>>, vector<256x768xbf16>
      %cst_43 = arith.constant dense<0.000000e+00> : vector<16x768xf32>
      %87 = tpu.matmul %85, %86, %cst_43 {dimension_numbers = #tpu.dot_dimension_numbers<[1], [0], [0], [1], [0, 0, 1, 1], [], []>} : vector<16x256xbf16>, vector<256x768xbf16>, vector<16x768xf32> -> vector<16x768xf32>
      %c0_44 = arith.constant 0 : index
      %c0_45 = arith.constant 0 : index
      %88 = vector.load %arg6[%c0_44, %c0_45] : memref<1x768xf32, #tpu.memory_space<vmem>>, vector<1x768xf32>
      %89 = vector.broadcast %88 : vector<1x768xf32> to vector<16x768xf32>
      %90 = arith.addf %87, %89 : vector<16x768xf32>
      %91 = vector.extract_strided_slice %90 {offsets = [0, 0], sizes = [16, 256], strides = [1, 1]} : vector<16x768xf32> to vector<16x256xf32>
      %cst_46 = arith.constant 0.0883883461 : f32
      %92 = vector.broadcast %cst_46 : f32 to vector<16x256xf32>
      %93 = arith.mulf %91, %92 : vector<16x256xf32>
      %94 = arith.truncf %93 : vector<16x256xf32> to vector<16x256xbf16>
      %95 = vector.extract_strided_slice %90 {offsets = [0, 256], sizes = [16, 256], strides = [1, 1]} : vector<16x768xf32> to vector<16x256xf32>
      %96 = arith.truncf %95 : vector<16x256xf32> to vector<16x256xbf16>
      %97 = vector.extract_strided_slice %90 {offsets = [0, 512], sizes = [16, 256], strides = [1, 1]} : vector<16x768xf32> to vector<16x256xf32>
      %98 = arith.truncf %97 : vector<16x256xf32> to vector<16x256xbf16>
      %99 = vector.extract_strided_slice %94 {offsets = [0, 0], sizes = [16, 128], strides = [1, 1]} : vector<16x256xbf16> to vector<16x128xbf16>
      %100 = vector.extract_strided_slice %96 {offsets = [0, 0], sizes = [16, 128], strides = [1, 1]} : vector<16x256xbf16> to vector<16x128xbf16>
      "tpu.trace_start"() <{level = 10 : i32, message = "qd,kd->qk"}> : () -> ()
      %cst_47 = arith.constant dense<0.000000e+00> : vector<16x16xf32>
      %101 = tpu.matmul %99, %100, %cst_47 {dimension_numbers = #tpu.dot_dimension_numbers<[1], [1], [0], [0], [0, 0, 1, 0], [], []>} : vector<16x128xbf16>, vector<16x128xbf16>, vector<16x16xf32> -> vector<16x16xf32>
      "tpu.trace_stop"() : () -> ()
      %cst_48 = arith.constant dense<0xFF800000> : vector<16xf32>
      %102 = vector.multi_reduction <maximumf>, %101, %cst_48 [1] : vector<16x16xf32> to vector<16xf32>
      %103 = vector.shape_cast %102 : vector<16xf32> to vector<16x1xf32>
      %104 = vector.broadcast %103 : vector<16x1xf32> to vector<16x16xf32>
      %105 = arith.subf %101, %104 : vector<16x16xf32>
      %106 = math.exp %105 : vector<16x16xf32>
      %cst_49 = arith.constant dense<0.000000e+00> : vector<16xf32>
      %107 = vector.multi_reduction <add>, %106, %cst_49 [1] : vector<16x16xf32> to vector<16xf32>
      %108 = vector.shape_cast %107 : vector<16xf32> to vector<16x1xf32>
      %109 = tpu.reciprocal %108 {approx = true} : vector<16x1xf32> -> vector<16x1xf32>
      %110 = vector.broadcast %109 : vector<16x1xf32> to vector<16x16xf32>
      %111 = arith.mulf %106, %110 : vector<16x16xf32>
      %112 = arith.truncf %111 : vector<16x16xf32> to vector<16x16xbf16>
      %113 = vector.extract_strided_slice %98 {offsets = [0, 0], sizes = [16, 128], strides = [1, 1]} : vector<16x256xbf16> to vector<16x128xbf16>
      %cst_50 = arith.constant dense<0.000000e+00> : vector<16x128xf32>
      %114 = tpu.matmul %112, %113, %cst_50 {dimension_numbers = #tpu.dot_dimension_numbers<[1], [0], [0], [1], [0, 0, 1, 1], [], []>} : vector<16x16xbf16>, vector<16x128xbf16>, vector<16x128xf32> -> vector<16x128xf32>
      %115 = arith.truncf %114 : vector<16x128xf32> to vector<16x128xbf16>
      %c0_51 = arith.constant 0 : index
      %c0_52 = arith.constant 0 : index
      %116 = vector.load %arg17[%c0_51, %c0_52] : memref<16x256xbf16, #tpu.memory_space<vmem>>, vector<16x128xbf16>
      tpu.vector_store %arg17[%c0_51, %c0_52], %115 {strides = array<i32>} : memref<16x256xbf16, #tpu.memory_space<vmem>>, vector<16x128xbf16>,
      %117 = vector.extract_strided_slice %94 {offsets = [0, 128], sizes = [16, 128], strides = [1, 1]} : vector<16x256xbf16> to vector<16x128xbf16>
      %118 = vector.extract_strided_slice %96 {offsets = [0, 128], sizes = [16, 128], strides = [1, 1]} : vector<16x256xbf16> to vector<16x128xbf16>
      "tpu.trace_start"() <{level = 10 : i32, message = "qd,kd->qk"}> : () -> ()
      %cst_53 = arith.constant dense<0.000000e+00> : vector<16x16xf32>
      %119 = tpu.matmul %117, %118, %cst_53 {dimension_numbers = #tpu.dot_dimension_numbers<[1], [1], [0], [0], [0, 0, 1, 0], [], []>} : vector<16x128xbf16>, vector<16x128xbf16>, vector<16x16xf32> -> vector<16x16xf32>
      "tpu.trace_stop"() : () -> ()
      %cst_54 = arith.constant dense<0xFF800000> : vector<16xf32>
      %120 = vector.multi_reduction <maximumf>, %119, %cst_54 [1] : vector<16x16xf32> to vector<16xf32>
      %121 = vector.shape_cast %120 : vector<16xf32> to vector<16x1xf32>
      %122 = vector.broadcast %121 : vector<16x1xf32> to vector<16x16xf32>
      %123 = arith.subf %119, %122 : vector<16x16xf32>
      %124 = math.exp %123 : vector<16x16xf32>
      %cst_55 = arith.constant dense<0.000000e+00> : vector<16xf32>
      %125 = vector.multi_reduction <add>, %124, %cst_55 [1] : vector<16x16xf32> to vector<16xf32>
      %126 = vector.shape_cast %125 : vector<16xf32> to vector<16x1xf32>
      %127 = tpu.reciprocal %126 {approx = true} : vector<16x1xf32> -> vector<16x1xf32>
      %128 = vector.broadcast %127 : vector<16x1xf32> to vector<16x16xf32>
      %129 = arith.mulf %124, %128 : vector<16x16xf32>
      %130 = arith.truncf %129 : vector<16x16xf32> to vector<16x16xbf16>
      %131 = vector.extract_strided_slice %98 {offsets = [0, 128], sizes = [16, 128], strides = [1, 1]} : vector<16x256xbf16> to vector<16x128xbf16>
      %cst_56 = arith.constant dense<0.000000e+00> : vector<16x128xf32>
      %132 = tpu.matmul %130, %131, %cst_56 {dimension_numbers = #tpu.dot_dimension_numbers<[1], [0], [0], [1], [0, 0, 1, 1], [], []>} : vector<16x16xbf16>, vector<16x128xbf16>, vector<16x128xf32> -> vector<16x128xf32>
      %133 = arith.truncf %132 : vector<16x128xf32> to vector<16x128xbf16>
      %c0_57 = arith.constant 0 : index
      %c128 = arith.constant 128 : index
      %134 = vector.load %arg17[%c0_57, %c128] : memref<16x256xbf16, #tpu.memory_space<vmem>>, vector<16x128xbf16>
      tpu.vector_store %arg17[%c0_57, %c128], %133 {strides = array<i32>} : memref<16x256xbf16, #tpu.memory_space<vmem>>, vector<16x128xbf16>,
      %c0_58 = arith.constant 0 : index
      %c0_59 = arith.constant 0 : index
      %135 = vector.load %arg17[%c0_58, %c0_59] : memref<16x256xbf16, #tpu.memory_space<vmem>>, vector<16x256xbf16>
      %c0_60 = arith.constant 0 : index
      %c0_61 = arith.constant 0 : index
      %136 = vector.load %arg7[%c0_60, %c0_61] : memref<256x256xbf16, #tpu.memory_space<vmem>>, vector<256x256xbf16>
      %cst_62 = arith.constant dense<0.000000e+00> : vector<16x256xf32>
      %137 = tpu.matmul %135, %136, %cst_62 {dimension_numbers = #tpu.dot_dimension_numbers<[1], [0], [0], [1], [0, 0, 1, 1], [], []>} : vector<16x256xbf16>, vector<256x256xbf16>, vector<16x256xf32> -> vector<16x256xf32>
      %c0_63 = arith.constant 0 : index
      %c0_64 = arith.constant 0 : index
      %138 = vector.load %arg8[%c0_63, %c0_64] : memref<1x256xf32, #tpu.memory_space<vmem>>, vector<1x256xf32>
      %139 = vector.broadcast %138 : vector<1x256xf32> to vector<16x256xf32>
      %140 = arith.addf %137, %139 : vector<16x256xf32>
      %141 = arith.addf %140, %60 : vector<16x256xf32>
      %c0_65 = arith.constant 0 : index
      %c0_66 = arith.constant 0 : index
      %142 = vector.load %arg9[%c0_65, %c0_66] : memref<1x256xf32, #tpu.memory_space<vmem>>, vector<1x256xf32>
      %c0_67 = arith.constant 0 : index
      %c0_68 = arith.constant 0 : index
      %143 = vector.load %arg10[%c0_67, %c0_68] : memref<1x256xf32, #tpu.memory_space<vmem>>, vector<1x256xf32>
      %cst_69 = arith.constant dense<0.000000e+00> : vector<16xf32>
      %144 = vector.multi_reduction <add>, %141, %cst_69 [1] : vector<16x256xf32> to vector<16xf32>
      %145 = vector.shape_cast %144 : vector<16xf32> to vector<16x1xf32>
      %cst_70 = arith.constant 2.560000e+02 : f32
      %146 = vector.broadcast %cst_70 : f32 to vector<16x1xf32>
      %147 = arith.divf %145, %146 : vector<16x1xf32>
      %148 = vector.broadcast %147 : vector<16x1xf32> to vector<16x256xf32>
      %149 = arith.subf %141, %148 : vector<16x256xf32>
      %150 = arith.mulf %149, %149 : vector<16x256xf32>
      %cst_71 = arith.constant dense<0.000000e+00> : vector<16xf32>
      %151 = vector.multi_reduction <add>, %150, %cst_71 [1] : vector<16x256xf32> to vector<16xf32>
      %152 = vector.shape_cast %151 : vector<16xf32> to vector<16x1xf32>
      %cst_72 = arith.constant 2.560000e+02 : f32
      %153 = vector.broadcast %cst_72 : f32 to vector<16x1xf32>
      %154 = arith.divf %152, %153 : vector<16x1xf32>
      %155 = vector.broadcast %147 : vector<16x1xf32> to vector<16x256xf32>
      %156 = arith.subf %141, %155 : vector<16x256xf32>
      %cst_73 = arith.constant 2.000000e-02 : f32
      %157 = vector.broadcast %cst_73 : f32 to vector<16x1xf32>
      %158 = arith.addf %154, %157 : vector<16x1xf32>
      %159 = math.rsqrt %158 : vector<16x1xf32>
      %160 = vector.broadcast %159 : vector<16x1xf32> to vector<16x256xf32>
      %161 = arith.mulf %156, %160 : vector<16x256xf32>
      %162 = vector.broadcast %142 : vector<1x256xf32> to vector<16x256xf32>
      %163 = arith.mulf %161, %162 : vector<16x256xf32>
      %164 = vector.broadcast %143 : vector<1x256xf32> to vector<16x256xf32>
      %165 = arith.addf %163, %164 : vector<16x256xf32>
      %166 = arith.truncf %165 : vector<16x256xf32> to vector<16x256xbf16>
      %c0_74 = arith.constant 0 : index
      %c0_75 = arith.constant 0 : index
      %167 = vector.load %arg16[%c0_74, %c0_75] : memref<16x256xbf16, #tpu.memory_space<vmem>>, vector<16x256xbf16>
      tpu.vector_store %arg16[%c0_74, %c0_75], %166 {strides = array<i32>} : memref<16x256xbf16, #tpu.memory_space<vmem>>, vector<16x256xbf16>,
      %c0_76 = arith.constant 0 : index
      %c0_77 = arith.constant 0 : index
      %168 = vector.load %arg14[%c0_76, %c0_77] : memref<1x256xf32, #tpu.memory_space<vmem>>, vector<1x256xf32>
      %169 = vector.broadcast %168 : vector<1x256xf32> to vector<16x256xf32>
      %170 = arith.addf %141, %169 : vector<16x256xf32>
      %c0_78 = arith.constant 0 : index
      %c0_79 = arith.constant 0 : index
      %c0_80 = arith.constant 0 : index
      %171 = vector.load %arg15[%c0_78, %c0_79, %c0_80] : memref<1x16x256xf32, #tpu.memory_space<vmem>>, vector<1x16x256xf32>
      %172 = vector.shape_cast %171 : vector<1x16x256xf32> to vector<16x256xf32>
      %173 = vector.shape_cast %170 : vector<16x256xf32> to vector<1x16x256xf32>
      tpu.vector_store %arg15[%c0_78, %c0_79, %c0_80], %173 {strides = array<i32>} : memref<1x16x256xf32, #tpu.memory_space<vmem>>, vector<1x16x256xf32>,
    } else {
    }
    %c0 = arith.constant 0 : index
    %c0_1 = arith.constant 0 : index
    %3 = vector.load %arg16[%c0, %c0_1] : memref<16x256xbf16, #tpu.memory_space<vmem>>, vector<16x256xbf16>
    %c0_2 = arith.constant 0 : index
    %c0_3 = arith.constant 0 : index
    %4 = vector.load %arg11[%c0_2, %c0_3] : memref<256x512xbf16, #tpu.memory_space<vmem>>, vector<256x512xbf16>
    %cst = arith.constant dense<0.000000e+00> : vector<16x512xf32>
    %5 = tpu.matmul %3, %4, %cst {dimension_numbers = #tpu.dot_dimension_numbers<[1], [0], [0], [1], [0, 0, 1, 1], [], []>} : vector<16x256xbf16>, vector<256x512xbf16>, vector<16x512xf32> -> vector<16x512xf32>
    %6 = arith.index_cast %arg1 : i32 to index
    %c0_4 = arith.constant 0 : index
    %7 = vector.load %arg12[%6, %c0_4] : memref<2x512xf32, #tpu.memory_space<vmem>>, vector<1x512xf32>
    %8 = vector.broadcast %7 : vector<1x512xf32> to vector<16x512xf32>
    %9 = arith.addf %5, %8 : vector<16x512xf32>
    %cst_5 = arith.constant 5.000000e-01 : f32
    %10 = vector.broadcast %cst_5 : f32 to vector<16x512xf32>
    %11 = arith.mulf %9, %10 : vector<16x512xf32>
    %cst_6 = arith.constant 0.707106769 : f32
    %12 = vector.broadcast %cst_6 : f32 to vector<16x512xf32>
    %13 = arith.mulf %9, %12 : vector<16x512xf32>
    %cst_7 = arith.constant 0.000000e+00 : f32
    %14 = vector.broadcast %cst_7 : f32 to vector<16x512xf32>
    %15 = arith.cmpf oge, %13, %14 : vector<16x512xf32>
    %cst_8 = arith.constant 1.000000e+00 : f32
    %cst_9 = arith.constant -1.000000e+00 : f32
    %16 = vector.broadcast %cst_8 : f32 to vector<16x512xf32>
    %17 = vector.broadcast %cst_9 : f32 to vector<16x512xf32>
    %18 = arith.select %15, %16, %17 : vector<16x512xi1>, vector<16x512xf32>
    %19 = math.absf %13 : vector<16x512xf32>
    %cst_10 = arith.constant 0.327591091 : f32
    %20 = vector.broadcast %cst_10 : f32 to vector<16x512xf32>
    %21 = arith.mulf %20, %19 : vector<16x512xf32>
    %cst_11 = arith.constant 1.000000e+00 : f32
    %22 = vector.broadcast %cst_11 : f32 to vector<16x512xf32>
    %23 = arith.addf %22, %21 : vector<16x512xf32>
    %24 = tpu.reciprocal %23 {approx = true} : vector<16x512xf32> -> vector<16x512xf32>
    %cst_12 = arith.constant 1.06140542 : f32
    %25 = vector.broadcast %cst_12 : f32 to vector<16x512xf32>
    %26 = arith.mulf %25, %24 : vector<16x512xf32>
    %cst_13 = arith.constant -1.45315206 : f32
    %27 = vector.broadcast %cst_13 : f32 to vector<16x512xf32>
    %28 = arith.addf %26, %27 : vector<16x512xf32>
    %29 = arith.mulf %28, %24 : vector<16x512xf32>
    %cst_14 = arith.constant 1.42141378 : f32
    %30 = vector.broadcast %cst_14 : f32 to vector<16x512xf32>
    %31 = arith.addf %29, %30 : vector<16x512xf32>
    %32 = arith.mulf %31, %24 : vector<16x512xf32>
    %cst_15 = arith.constant -0.284496725 : f32
    %33 = vector.broadcast %cst_15 : f32 to vector<16x512xf32>
    %34 = arith.addf %32, %33 : vector<16x512xf32>
    %35 = arith.mulf %34, %24 : vector<16x512xf32>
    %cst_16 = arith.constant 0.254829586 : f32
    %36 = vector.broadcast %cst_16 : f32 to vector<16x512xf32>
    %37 = arith.addf %35, %36 : vector<16x512xf32>
    %38 = arith.mulf %37, %24 : vector<16x512xf32>
    %cst_17 = arith.constant 0.000000e+00 : f32
    %39 = vector.broadcast %cst_17 : f32 to vector<16x512xf32>
    %40 = arith.subf %39, %19 : vector<16x512xf32>
    %41 = arith.mulf %40, %19 : vector<16x512xf32>
    %42 = math.exp %41 : vector<16x512xf32>
    %43 = arith.mulf %38, %42 : vector<16x512xf32>
    %cst_18 = arith.constant 1.000000e+00 : f32
    %44 = vector.broadcast %cst_18 : f32 to vector<16x512xf32>
    %45 = arith.subf %44, %43 : vector<16x512xf32>
    %46 = arith.mulf %18, %45 : vector<16x512xf32>
    %cst_19 = arith.constant 1.000000e+00 : f32
    %47 = vector.broadcast %cst_19 : f32 to vector<16x512xf32>
    %48 = arith.addf %47, %46 : vector<16x512xf32>
    %49 = arith.mulf %11, %48 : vector<16x512xf32>
    %c0_20 = arith.constant 0 : index
    %c0_21 = arith.constant 0 : index
    %c0_22 = arith.constant 0 : index
    %50 = vector.load %arg15[%c0_20, %c0_21, %c0_22] : memref<1x16x256xf32, #tpu.memory_space<vmem>>, vector<1x16x256xf32>
    %51 = vector.shape_cast %50 : vector<1x16x256xf32> to vector<16x256xf32>
    %52 = arith.truncf %49 : vector<16x512xf32> to vector<16x512xbf16>
    %c0_23 = arith.constant 0 : index
    %c0_24 = arith.constant 0 : index
    %53 = vector.load %arg13[%c0_23, %c0_24] : memref<512x256xbf16, #tpu.memory_space<vmem>>, vector<512x256xbf16>
    %cst_25 = arith.constant dense<0.000000e+00> : vector<16x256xf32>
    %54 = tpu.matmul %52, %53, %cst_25 {dimension_numbers = #tpu.dot_dimension_numbers<[1], [0], [0], [1], [0, 0, 1, 1], [], []>} : vector<16x512xbf16>, vector<512x256xbf16>, vector<16x256xf32> -> vector<16x256xf32>
    %55 = arith.addf %51, %54 : vector<16x256xf32>
    %c0_26 = arith.constant 0 : index
    %c0_27 = arith.constant 0 : index
    %c0_28 = arith.constant 0 : index
    %56 = vector.load %arg15[%c0_26, %c0_27, %c0_28] : memref<1x16x256xf32, #tpu.memory_space<vmem>>, vector<1x16x256xf32>
    %57 = vector.shape_cast %56 : vector<1x16x256xf32> to vector<16x256xf32>
    %58 = vector.shape_cast %55 : vector<16x256xf32> to vector<1x16x256xf32>
    tpu.vector_store %arg15[%c0_26, %c0_27, %c0_28], %58 {strides = array<i32>} : memref<1x16x256xf32, #tpu.memory_space<vmem>>, vector<1x16x256xf32>,
    return
  }
  func.func @transform_0(%arg0: i32, %arg1: i32) -> (i32, i32, i32) {
    %c0_i32 = arith.constant 0 : i32
    %c0_i32_0 = arith.constant 0 : i32
    %c0_i32_1 = arith.constant 0 : i32
    return %arg0, %c0_i32, %c0_i32_0 : i32, i32, i32
  }
  func.func @transform_1(%arg0: i32, %arg1: i32) -> (i32, i32) {
    %c0_i32 = arith.constant 0 : i32
    %c0_i32_0 = arith.constant 0 : i32
    %c0_i32_1 = arith.constant 0 : i32
    return %c0_i32, %c0_i32_0 : i32, i32
  }
  func.func @transform_2(%arg0: i32, %arg1: i32) -> (i32, i32) {
    %c0_i32 = arith.constant 0 : i32
    %c0_i32_0 = arith.constant 0 : i32
    %c0_i32_1 = arith.constant 0 : i32
    return %c0_i32, %c0_i32_0 : i32, i32
  }
  func.func @transform_3(%arg0: i32, %arg1: i32) -> (i32, i32) {
    %c0_i32 = arith.constant 0 : i32
    %c0_i32_0 = arith.constant 0 : i32
    %c0_i32_1 = arith.constant 0 : i32
    return %c0_i32, %c0_i32_0 : i32, i32
  }
  func.func @transform_4(%arg0: i32, %arg1: i32) -> (i32, i32) {
    %c0_i32 = arith.constant 0 : i32
    %c0_i32_0 = arith.constant 0 : i32
    %c0_i32_1 = arith.constant 0 : i32
    return %c0_i32, %c0_i32_0 : i32, i32
  }
  func.func @transform_5(%arg0: i32, %arg1: i32) -> (i32, i32) {
    %c0_i32 = arith.constant 0 : i32
    %c0_i32_0 = arith.constant 0 : i32
    %c0_i32_1 = arith.constant 0 : i32
    return %c0_i32, %c0_i32_0 : i32, i32
  }
  func.func @transform_6(%arg0: i32, %arg1: i32) -> (i32, i32) {
    %c0_i32 = arith.constant 0 : i32
    %c0_i32_0 = arith.constant 0 : i32
    %c0_i32_1 = arith.constant 0 : i32
    return %c0_i32, %c0_i32_0 : i32, i32
  }
  func.func @transform_7(%arg0: i32, %arg1: i32) -> (i32, i32) {
    %c0_i32 = arith.constant 0 : i32
    %c0_i32_0 = arith.constant 0 : i32
    %c0_i32_1 = arith.constant 0 : i32
    return %c0_i32, %c0_i32_0 : i32, i32
  }
  func.func @transform_8(%arg0: i32, %arg1: i32) -> (i32, i32) {
    %c0_i32 = arith.constant 0 : i32
    %c0_i32_0 = arith.constant 0 : i32
    %c0_i32_1 = arith.constant 0 : i32
    return %c0_i32, %c0_i32_0 : i32, i32
  }
  func.func @transform_9(%arg0: i32, %arg1: i32) -> (i32, i32) {
    %c0_i32 = arith.constant 0 : i32
    %c0_i32_0 = arith.constant 0 : i32
    return %c0_i32, %arg1 : i32, i32
  }
  func.func @transform_10(%arg0: i32, %arg1: i32) -> (i32, i32) {
    %c0_i32 = arith.constant 0 : i32
    %c0_i32_0 = arith.constant 0 : i32
    %c0_i32_1 = arith.constant 0 : i32
    return %c0_i32, %c0_i32_0 : i32, i32
  }
  func.func @transform_11(%arg0: i32, %arg1: i32) -> (i32, i32) {
    %c0_i32 = arith.constant 0 : i32
    %c0_i32_0 = arith.constant 0 : i32
    return %arg1, %c0_i32 : i32, i32
  }
  func.func @transform_12(%arg0: i32, %arg1: i32) -> (i32, i32) {
    %c0_i32 = arith.constant 0 : i32
    %c0_i32_0 = arith.constant 0 : i32
    %c0_i32_1 = arith.constant 0 : i32
    return %c0_i32, %c0_i32_0 : i32, i32
  }
  func.func @transform_13(%arg0: i32, %arg1: i32) -> (i32, i32, i32) {
    %c0_i32 = arith.constant 0 : i32
    %c0_i32_0 = arith.constant 0 : i32
    %c0_i32_1 = arith.constant 0 : i32
    return %arg0, %c0_i32, %c0_i32_0 : i32, i32, i32
  }
}

</mosaic_0001>

<bundles_post_ra>
// kernel: tpu_custom_call.1
= control target key start
LH: loop header
LB: loop body
LE: loop exit
PB: predicated region body
PF: predicated region fallthrough
CT: control target
= control target key end

     0   :  { %s5569_s0 = inlined_call_operand.hbm [shape: f32[2,16,256], index: 0, kind: input, shape index: {}]   ;;  %s5570_s1 = inlined_call_operand.hbm [shape: f32[1,256], index: 1, kind: input, shape index: {}]   ;;  %s5571_s2 = inlined_call_operand.hbm [shape: f32[1,256], index: 2, kind: input, shape index: {}]   ;;  %s5572_s3 = inlined_call_operand.hbm [shape: bf16[256,768], index: 3, kind: input, shape index: {}]   ;;  %s5573_s4 = inlined_call_operand.vmem [shape: f32[1,768], index: 4, kind: input, shape index: {}]   ;;  %s5574_s5 = inlined_call_operand.hbm [shape: bf16[256,256], index: 5, kind: input, shape index: {}]   ;;  %s5575_s6 = inlined_call_operand.vmem [shape: f32[1,256], index: 6, kind: input, shape index: {}]   ;;  %s5576_s7 = inlined_call_operand.vmem [shape: f32[1,256], index: 7, kind: input, shape index: {}]   ;;  %s5577_s8 = inlined_call_operand.vmem [shape: f32[1,256], index: 8, kind: input, shape index: {}]   ;;  %s5578_s9 = inlined_call_operand.hbm [shape: bf16[256,1024], index: 9, kind: input, shape index: {}]   ;;  %s5579_s10 = inlined_call_operand.vmem [shape: f32[2,512], index: 10, kind: input, shape index: {}]   ;;  %s5580_s11 = inlined_call_operand.hbm [shape: bf16[1024,256], index: 11, kind: input, shape index: {}]   ;;  %s5581_s12 = inlined_call_operand.vmem [shape: f32[1,256], index: 12, kind: input, shape index: {}]   ;;  %s5582_s13 = inlined_call_operand.hbm [shape: f32[2,16,256], index: 13, kind: output, shape index: {}]  }
   0x1   :  { %5608 = sst [smem:[#allocation31_spill]] %s5570_s1 }
   0x2   :  { %5609 = sst [smem:[#allocation32_spill]] %s5571_s2 }
   0x3   :  { %5610 = sst [smem:[#allocation33_spill]] %s5572_s3 }
   0x4   :  { %5611 = sst [smem:[#allocation34_spill]] %s5573_s4 }
   0x5   :  { %5612 = sst [smem:[#allocation35_spill]] %s5574_s5 }
   0x6   :  { %5613 = sst [smem:[#allocation36_spill]] %s5575_s6 }
   0x7   :  { %5614 = sst [smem:[#allocation37_spill]] %s5576_s7 }
   0x8   :  { %5615 = sst [smem:[#allocation38_spill]] %s5577_s8 }
   0x9   :  { %5616 = sst [smem:[#allocation39_spill]] %s5578_s9 }
   0xa   :  { %5617 = sst [smem:[#allocation40_spill]] %s5579_s10 }
   0xb   :  { %5618 = sst [smem:[#allocation41_spill]] %s5581_s12 }
   0xc   :  { %5619 = sst [smem:[#allocation42_spill]] %s5582_s13 }
   0xd   :  { %18 = vsyncpa [#allocation5], 0 }
   0xe   :  { %20 = vsyncpa [#allocation5 + $0x1], 0 }
   0xf   :  { %21 = vsyncpa [#allocation8], 0 }
  0x10   :  { %22 = vsyncpa [#allocation11], 0 }
  0x11   :  { %23 = vsyncpa [#allocation14], 0 }
  0x12   :  { %25 = vsyncpa [#allocation14 + $0x1], 0 }
  0x13   :  { %26 = vsyncpa [#allocation6], 0 }
  0x14   :  { %28 = vsyncpa [#allocation6 + $0x1], 0  ;;  %s4740_s25 = smov 0   ;;  %s4742_s26 = smov 0  }
  0x15   :  { %s4744_s27 = smov 0   ;;  %s4746_s28 = smov 0  }
  0x16   :  { %s4748_s29 = smov 0   ;;  %s4750_s30 = smov 0  }
  0x17   :  { %s4752_s14 = smov 0   ;;  %s4754_s15 = smov 0  }
  0x18   :  { %s4756_s16 = smov 0   ;;  %s4758_s17 = smov 0  }
  0x19   :  { %s4760_s18 = smov 0  }
  0x1a LB: > { %5620 = sst [smem:[#allocation22_spill]] %s4612_s26  ;;  %s4794_s19 = sadd.s32 4294967295, %s4648_s18   ;;  %s4648_s18 = sphi %s4760_s18, %s34_s18   ;;  %s4644_s17 = sphi %s4758_s17, %s5692_s17   ;;  %s4640_s16 = sphi %s4756_s16, %s5691_s16   ;;  %s4636_s15 = sphi %s4754_s15, %s5690_s15   ;;  %s4632_s14 = sphi %s4752_s14, %s5689_s14   ;;  %s4628_s30 = sphi %s4750_s30, %s5688_s30   ;;  %s4624_s29 = sphi %s4748_s29, %s5687_s29   ;;  %s4620_s28 = sphi %s4746_s28, %s5686_s28   ;;  %s4616_s27 = sphi %s4744_s27, %s5685_s27   ;;  %s4612_s26 = sphi %s4742_s26, %s5681_s26   ;;  %s4608_s25 = sphi %s4740_s25, %s5680_s25  }
  0x1b   : > { %5621 = sst [smem:[#allocation23_spill]] %s4616_s27  ;;  %p260_p0 = scmp.ne.s32.totalorder %s4612_s26, %s4608_s25 }
  0x1c   : > { %5622 = sst [smem:[#allocation24_spill]] %s4632_s14  ;;  %p5584_p1 = scmp.eq.s32.totalorder %s4794_s19, 0 }
  0x1d   : > { %5623 = sst [smem:[#allocation25_spill]] %s4636_s15  ;;  %p3370_p3 = scmp.ge.s32.totalorder %s4648_s18, 1 }
  0x1e   : > { %p365_p4 = scmp.lt.s32.totalorder %s4648_s18, 5  ;;  %p4803_p5 = por %p260_p0, %p5584_p1 }
  0x1f   : > { %s4650_s22 = smov [#allocation7]   ;;  %s4651_s25 = smov [#allocation10]  }
  0x20   : > { %s5624_s20 = scalar_select %p4803_p5, 1, 0 }
  0x21   : > { %p4807_p6 = pnand %p3370_p3, %p365_p4  ;;  %s378_s23 = sshll.u32 %s4650_s22, 4  ;;  %s379_s23 = int_to_ptr.vmem [resolvable:$true] %s378_s23 }
  0x22   : > { %5625 = sst [smem:[#allocation26_spill]] %s5624_s20  ;;  %s399_s13 = sshll.u32 %s4651_s25, 4  ;;  %s4819_s13 = int_to_ptr.vmem [resolvable:$true] %s399_s13 }
  0x23   : > { %s5626_s21 = scalar_select %p4807_p6, 1, 0 }
  0x24   : > { %p3727_p7 = pneg %p4807_p6  ;;  %s5629_s1 = sld [smem:[#allocation31_spill]] }
  0x25   : > { %5627 = sst [smem:[#allocation27_spill]] %s5626_s21 }
  0x26   : > { %p4815_p8 = pnand %p3727_p7, %p5584_p1 }
  0x28   : > { %s5628_s24 = scalar_select %p4815_p8, 1, 0 }
  0x29   : > { %p4829_p10 = pneg %p4815_p8 }
  0x2a   : > { %s4312_s8 = scalar_lea.hbm %s5629_s1, 32 }
  0x2b   : > { %p4313_p9 = scmp.ne.s32.totalorder %s5629_s1, %s4312_s8  ;;  %p4319_p13 = scmp.lt.u32.totalorder %s4312_s8, %s5629_s1 }
  0x2d   : > { %p4315_p11 = pnand %p4829_p10, %p4313_p9 }
  0x2f   : > { %p4316_p12 = pneg %p4315_p11 }
  0x31   : > { %p4321_p0 = pnand %p4319_p13, %p4316_p12 }
  0x33   : > { %4324 = shalt.err (!%p4321_p0)
}
  0x34   : > { %s4325_s10 = scalar_lea.vmem %s379_s23, 32  ;;  %p4333_p1 = scmp.lt.s32.totalorder %s379_s23, %s379_s23 }
  0x35   : > { %p4326_p3 = scmp.ne.s32.totalorder %s379_s23, %s4325_s10  ;;  %p4334_p2 = scmp.lt.s32.totalorder %s4325_s10, %s4325_s10 }
  0x37   : > { %p4328_p4 = pnand %p4326_p3, %p4829_p10  ;;  %p4335_p5 = por %p4334_p2, %p4333_p1 }
  0x39   : > { %p4329_p7 = pneg %p4328_p4 }
  0x3b   : > { %p4336_p6 = pnand %p4335_p5, %p4329_p7 }
  0x3d   : > { %4339 = shalt.err (!%p4336_p6)
}
  0x3e   : > { %3730 = dma.hbm_to_vmem [thread:$0]  (!%p4815_p8), %s5629_s1, 32, %s379_s23, [#allocation8]  }
  0x3f   : > { %s5631_s3 = sld [smem:[#allocation33_spill]] }
  0x45   : > { %s4340_s15 = scalar_lea.hbm %s5631_s3, 12288 }
  0x46   : > { %p4341_p9 = scmp.ne.s32.totalorder %s5631_s3, %s4340_s15  ;;  %p4347_p2 = scmp.lt.u32.totalorder %s4340_s15, %s5631_s3 }
  0x48   : > { %p4343_p11 = pnand %p4341_p9, %p4829_p10 }
  0x4a   : > { %p4344_p1 = pneg %p4343_p11 }
  0x4c   : > { %p4349_p5 = pnand %p4347_p2, %p4344_p1 }
  0x4e   : > { %4352 = shalt.err (!%p4349_p5)
}
  0x4f   : > { %s4353_s23 = scalar_lea.vmem %s4819_s13, 12288  ;;  %p4361_p0 = scmp.lt.s32.totalorder %s4819_s13, %s4819_s13 }
  0x50   : > { %p4354_p6 = scmp.ne.s32.totalorder %s4819_s13, %s4353_s23  ;;  %p4362_p3 = scmp.lt.s32.totalorder %s4353_s23, %s4353_s23 }
  0x52   : > { %p4356_p12 = pnand %p4354_p6, %p4829_p10  ;;  %p4363_p4 = por %p4362_p3, %p4361_p0 }
  0x54   : > { %p4357_p13 = pneg %p4356_p12 }
  0x56   : > { %p4364_p7 = pnand %p4363_p4, %p4357_p13 }
  0x58   : > { %4367 = shalt.err (!%p4364_p7)
}
  0x59   : > { %s4652_s4 = smov 384   ;;  %s4653_s14 = smov 24  }
  0x5a   : > { %3736 = dma.hbm_to_vmem [thread:$0]  (!%p4815_p8), %s5631_s3, 12288, %s4819_s13, [#allocation11], %s4652_s4, %s4652_s4, %s4653_s14  }
  0x5b   : > { %p5591_p9 = scmp.eq.s32.totalorder %s4648_s18, 0  ;;  %s43_s6 = sadd.s32 1, %s4640_s16 }
  0x5c   : > { %s247_s8 = sadd.s32 1, %s4616_s27  ;;  %p4871_p11 = scmp.ge.s32.totalorder %s43_s6, 2 }
  0x5d   : > { %p254_p1 = scmp.ne.s32.totalorder %s4616_s27, %s4612_s26  ;;  %p5590_p2 = scmp.lt.s32.totalorder %s4648_s18, 4 }
  0x5e   : > { %s5632_s15 = scalar_select %p4871_p11, 1, 0 }
  0x5f   : > { %s5694_s6 = smov (%p4871_p11, %s43_s6), 0  ;;  %p256_p5 = por %p254_p1, %p5591_p9 }
  0x60   : > { %5633 = sst [smem:[#allocation28_spill]] %s5694_s6  ;;  %s244_s25 = ssub.s32 %s4640_s16, %s5694_s6 }
  0x61   : > { %s465_s10 = sand.u32 1, %s4648_s18   ;;  %p245_p6 = scmp.eq.s32.totalorder %s244_s25, 0 }
  0x62   : > { %s467_s13 = sand.u32 1, %s4616_s27   ;;  %s3662_s23 = sshll.u32 %s4640_s16, 8 }
  0x63   : > { %s4890_s4 = scalar_select %p245_p6, %s4616_s27, %s247_s8  }
  0x64   : > { %s4892_s14 = sshll.u32 %s467_s13, 9  ;;  %s5635_s9 = sld [smem:[#allocation39_spill]] }
  0x65   : > { %5634 = sst [smem:[#allocation29_spill]] %s4890_s4  ;;  %p4901_p12 = pnand %p5590_p2, %p256_p5 }
  0x66   : > { %s469_s8 = scalar_lea.vmem [#allocation13], %s4892_s14  ;;  %s4908_s13 = scalar_lea.sflag [#allocation14], %s465_s10 }
  0x67   : > { %s5636_s3 = scalar_select %p4901_p12, 1, 0 }
  0x68   : > { %s476_s25 = sshll.u32 %s469_s8, 4  ;;  %p5601_p0 = pneg %p4901_p12  ;;  %s4906_s25 = int_to_ptr.vmem [resolvable:$true] %s476_s25 }
  0x69   : > { %5637 = sst [smem:[#allocation30_spill]] %s5636_s3 }
  0x6a   : > { %s4897_s1 = scalar_lea.hbm %s5635_s9, %s3662_s23  ;;  %s4373_s6 = scalar_lea.hbm %s5635_s9, 16384 }
  0x6b   : > { %s4368_s7 = scalar_lea.hbm %s4897_s1, 8192  ;;  %p4374_p7 = scmp.lt.u32.totalorder %s4897_s1, %s5635_s9 }
  0x6c   : > { %p4369_p13 = scmp.ne.s32.totalorder %s4897_s1, %s4368_s7  ;;  %p4375_p1 = scmp.lt.u32.totalorder %s4373_s6, %s4368_s7 }
  0x6d   : > { %p4377_p6 = scmp.lt.u32.totalorder %s4368_s7, %s4897_s1 }
  0x6e   : > { %p4371_p3 = pnand %p5601_p0, %p4369_p13  ;;  %p4376_p5 = por %p4375_p1, %p4374_p7 }
  0x70   : > { %p4372_p4 = pneg %p4371_p3  ;;  %p4378_p2 = por %p4377_p6, %p4376_p5 }
  0x72   : > { %p4379_p9 = pnand %p4378_p2, %p4372_p4 }
  0x74   : > { %4382 = shalt.err (!%p4379_p9)
}
  0x75   : > { %s4383_s10 = scalar_lea.vmem %s4906_s25, 8192  ;;  %s4654_s8 = smov [#allocation13]  }
  0x76   : > { %p4384_p13 = scmp.ne.s32.totalorder %s4906_s25, %s4383_s10  ;;  %s4388_s23 = sshll.u32 %s4654_s8, 4  ;;  %s4389_s23 = int_to_ptr.vmem [resolvable:$false] %s4388_s23 }
  0x77   : > { %s4390_s27 = scalar_lea.vmem %s4389_s23, 16384  ;;  %p4391_p8 = scmp.lt.s32.totalorder %s4906_s25, %s4389_s23 }
  0x78   : > { %p4386_p3 = pnand %p4384_p13, %p5601_p0  ;;  %p4392_p7 = scmp.lt.s32.totalorder %s4390_s27, %s4383_s10 }
  0x7a   : > { %p4387_p11 = pneg %p4386_p3  ;;  %p4393_p1 = por %p4392_p7, %p4391_p8 }
  0x7c   : > { %p4394_p5 = pnand %p4393_p1, %p4387_p11 }
  0x7e   : > { %4397 = shalt.err (!%p4394_p5)
}
  0x7f   : > { %s4655_s6 = smov 512   ;;  %s5604_s4 = smov 256  }
  0x80   : > { %s5605_s7 = smov 16   ;;  %s4658_s12 = smov [#allocation9]  }
  0x81   : > { %3746 = dma.hbm_to_vmem [thread:$0]  (!%p4901_p12), %s4897_s1, 8192, %s4906_s25, %s4908_s13, %s4655_s6, %s5604_s4, %s5605_s7  }
  0x82   : > { %s389_s8 = sshll.u32 %s4658_s12, 4  ;;  %s4659_s9 = smov [#allocation12]   ;;  %s390_s8 = int_to_ptr.vmem [resolvable:$true] %s389_s8 }
  0x83   : > { %s415_s23 = sshll.u32 %s4659_s9, 4  ;;  %s5638_s2 = sld [smem:[#allocation32_spill]]  ;;  %s4938_s23 = int_to_ptr.vmem [resolvable:$true] %s415_s23 }
  0x89   : > { %s4398_s20 = scalar_lea.hbm %s5638_s2, 32 }
  0x8a   : > { %p4399_p8 = scmp.ne.s32.totalorder %s5638_s2, %s4398_s20  ;;  %p4405_p2 = scmp.lt.u32.totalorder %s4398_s20, %s5638_s2 }
  0x8c   : > { %p4401_p9 = pnand %p4399_p8, %p4829_p10 }
  0x8e   : > { %p4402_p11 = pneg %p4401_p9 }
  0x90   : > { %p4407_p4 = pnand %p4405_p2, %p4402_p11 }
  0x92   : > { %4410 = shalt.err (!%p4407_p4)
}
  0x93   : > { %s4411_s9 = scalar_lea.vmem %s390_s8, 32  ;;  %p4419_p7 = scmp.lt.s32.totalorder %s390_s8, %s390_s8 }
  0x94   : > { %p4412_p6 = scmp.ne.s32.totalorder %s390_s8, %s4411_s9  ;;  %p4420_p1 = scmp.lt.s32.totalorder %s4411_s9, %s4411_s9 }
  0x96   : > { %p4414_p13 = pnand %p4412_p6, %p4829_p10  ;;  %p4421_p5 = por %p4420_p1, %p4419_p7 }
  0x98   : > { %p4415_p3 = pneg %p4414_p13 }
  0x9a   : > { %p4422_p0 = pnand %p4421_p5, %p4415_p3 }
  0x9c   : > { %4425 = shalt.err (!%p4422_p0)
}
  0x9d   : > { %p5639_p8 = scmp.ne.s32.totalorder %s5628_s24, 0  ;;  %s5640_s5 = sld [smem:[#allocation35_spill]] }
  0x9f   : > { %3733 = dma.hbm_to_vmem [thread:$0]  (!%p5639_p8), %s5638_s2, 32, %s390_s8, [#allocation8]  }
  0xa3   : > { %s4426_s25 = scalar_lea.hbm %s5640_s5, 4096 }
  0xa4   : > { %p4427_p9 = scmp.ne.s32.totalorder %s5640_s5, %s4426_s25  ;;  %p4433_p0 = scmp.lt.u32.totalorder %s4426_s25, %s5640_s5 }
  0xa6   : > { %p4429_p11 = pnand %p4427_p9, %p4829_p10 }
  0xa8   : > { %p4430_p2 = pneg %p4429_p11 }
  0xaa   : > { %p4435_p4 = pnand %p4433_p0, %p4430_p2 }
  0xac   : > { %4438 = shalt.err (!%p4435_p4)
}
  0xad   : > { %s4439_s8 = scalar_lea.vmem %s4938_s23, 4096  ;;  %p4447_p7 = scmp.lt.s32.totalorder %s4938_s23, %s4938_s23 }
  0xae   : > { %p4440_p6 = scmp.ne.s32.totalorder %s4938_s23, %s4439_s8  ;;  %p4448_p1 = scmp.lt.s32.totalorder %s4439_s8, %s4439_s8 }
  0xb0   : > { %p4442_p13 = pnand %p4440_p6, %p4829_p10  ;;  %p4449_p5 = por %p4448_p1, %p4447_p7 }
  0xb2   : > { %p4443_p3 = pneg %p4442_p13 }
  0xb4   : > { %p4450_p9 = pnand %p4449_p5, %p4443_p3 }
  0xb6   : > { %4453 = shalt.err (!%p4450_p9)
}
  0xb7   : > { %s5602_s1 = smov 128   ;;  %s5603_s22 = smov 8  }
  0xb8   : > { %3739 = dma.hbm_to_vmem [thread:$0]  (!%p5639_p8), %s5640_s5, 4096, %s4938_s23, [#allocation11], %s5602_s1, %s5602_s1, %s5603_s22  }
  0xb9   : > { %s3369_s21 = sadd.s32 4294967294, %s4648_s18   ;;  %s46_s3 = sadd.s32 1, %s4644_s17 }
  0xba   : > { %p5641_p10 = scmp.ne.s32.totalorder %s5632_s15, 0  ;;  %s53_s20 = sadd.s32 1, %s4628_s30 }
  0xbb   : > { %p60_p11 = scmp.ne.s32.totalorder %s4628_s30, %s4624_s29  ;;  %p66_p0 = scmp.ne.s32.totalorder %s4624_s29, %s4620_s28 }
  0xbc   : > { %s5696_s3 = smov (!%p5641_p10, %s46_s3), %s4644_s17  ;;  %p5642_p4 = scmp.eq.s32.totalorder %s4648_s18, 0 }
  0xbd   : > { %p48_p2 = scmp.ge.s32.totalorder %s5696_s3, 2  ;;  %p5644_p13 = scmp.eq.s32.totalorder %s4794_s19, 3 }
  0xbe   : > { %p4996_p6 = por %p5642_p4, %p60_p11  ;;  %p5646_p8 = scmp.eq.s32.totalorder %s4794_s19, 0 }
  0xbf   : > { %p5002_p3 = por %p5644_p13, %p60_p11  ;;  %s5698_s3 = smov (%p48_p2, %s5696_s3), 0 }
  0xc0   : > { %p5010_p7 = por %p5646_p8, %p66_p0  ;;  %p358_p1 = scmp.eq.s32.totalorder %s3369_s21, 3 }
  0xc1   : > { %s5645_s23 = scalar_select %p5002_p3, 1, 0 }
  0xc2   : > { %s5647_s15 = scalar_select %p5010_p7, 1, 0 }
  0xc3   : > { %s50_s25 = ssub.s32 %s4644_s17, %s5698_s3  ;;  %s444_s6 = sand.u32 1, %s4628_s30  }
  0xc4   : > { %p51_p5 = scmp.eq.s32.totalorder %s50_s25, 0  ;;  %p5017_p9 = por %p358_p1, %p66_p0 }
  0xc5   : > { %s3376_s10 = sshll.u32 %s444_s6, 5  ;;  %s3661_s8 = sshll.u32 %s4644_s17, 9 }
  0xc6   : > { %s5648_s12 = scalar_select %p5017_p9, 1, 0 }
  0xc7   : > { %s5022_s27 = scalar_select %p51_p5, %s4628_s30, %s53_s20  }
  0xc8   : > { %s5028_s1 = scalar_lea.hbm %s5569_s0, %s3661_s8  ;;  %s448_s21 = scalar_lea.vmem [#allocation4], %s3376_s10 }
  0xc9   : > { %s455_s22 = sshll.u32 %s448_s21, 4  ;;  %p5649_p10 = scmp.lt.s32.totalorder %s4648_s18, 4  ;;  %s5030_s22 = int_to_ptr.vmem [resolvable:$true] %s455_s22 }
  0xca   : > { %s3664_s20 = sshll.u32 %s4640_s16, 13  ;;  %s5046_s4 = scalar_lea.sflag [#allocation5], %s444_s6 }
  0xcb   : > { %p5036_p11 = pnand %p5649_p10, %p4996_p6  ;;  %s5044_s26 = scalar_lea.hbm %s5580_s11, %s3664_s20 }
  0xcc   : > { %s4454_s10 = scalar_lea.hbm %s5028_s1, 512  ;;  %s4459_s7 = scalar_lea.hbm %s5569_s0, 1024 }
  0xcd   : > { %p4455_p2 = scmp.ne.s32.totalorder %s5028_s1, %s4454_s10  ;;  %p4456_p0 = pneg %p5036_p11 }
  0xce   : > { %p4460_p13 = scmp.lt.u32.totalorder %s5028_s1, %s5569_s0  ;;  %p4461_p8 = scmp.lt.u32.totalorder %s4459_s7, %s4454_s10 }
  0xcf   : > { %p4457_p4 = pnand %p4456_p0, %p4455_p2  ;;  %p4463_p5 = scmp.lt.u32.totalorder %s4454_s10, %s5028_s1 }
  0xd0   : > { %p4462_p1 = por %p4461_p8, %p4460_p13 }
  0xd1   : > { %p4458_p6 = pneg %p4457_p4 }
  0xd2   : > { %p4464_p10 = por %p4463_p5, %p4462_p1 }
  0xd4   : > { %p4465_p9 = pnand %p4464_p10, %p4458_p6 }
  0xd6   : > { %4468 = shalt.err (!%p4465_p9)
}
  0xd7   : > { %s4469_s6 = scalar_lea.vmem %s5030_s22, 512  ;;  %s4662_s20 = smov [#allocation4]  }
  0xd8   : > { %p4470_p2 = scmp.ne.s32.totalorder %s5030_s22, %s4469_s6  ;;  %s4474_s9 = sshll.u32 %s4662_s20, 4  ;;  %s4475_s9 = int_to_ptr.vmem [resolvable:$false] %s4474_s9 }
  0xd9   : > { %s4476_s2 = scalar_lea.vmem %s4475_s9, 1024  ;;  %p4477_p7 = scmp.lt.s32.totalorder %s5030_s22, %s4475_s9 }
  0xda   : > { %p4472_p4 = pnand %p4470_p2, %p4456_p0  ;;  %p4478_p13 = scmp.lt.s32.totalorder %s4476_s2, %s4469_s6 }
  0xdc   : > { %p4473_p3 = pneg %p4472_p4  ;;  %p4479_p8 = por %p4478_p13, %p4477_p7 }
  0xde   : > { %p4480_p1 = pnand %p4479_p8, %p4473_p3 }
  0xe0   : > { %4483 = shalt.err (!%p4480_p1)
}
  0xe1   : > { %s5651_s5 = smov 16   ;;  %s5652_s7 = smov 256  }
  0xe2   : > { %3743 = dma.hbm_to_vmem [thread:$0]  (!%p5036_p11), %s5028_s1, 512, %s5030_s22, %s5046_s4, %s5652_s7, %s5652_s7, %s5651_s5  }
  0xe3   : > { %s490_s10 = scalar_lea.vmem [#allocation15], %s4892_s14  ;;  %s4484_s21 = scalar_lea.hbm %s5044_s26, 8192 }
  0xe4   : > { %s498_s24 = sshll.u32 %s490_s10, 4  ;;  %p4485_p3 = scmp.ne.s32.totalorder %s5044_s26, %s4484_s21  ;;  %s5078_s24 = int_to_ptr.vmem [resolvable:$true] %s498_s24 }
  0xe5   : > { %p5654_p7 = pneg %p4901_p12  ;;  %s4489_s20 = scalar_lea.hbm %s5580_s11, 16384 }
  0xe6   : > { %p4490_p6 = scmp.lt.u32.totalorder %s5044_s26, %s5580_s11  ;;  %p4491_p5 = scmp.lt.u32.totalorder %s4489_s20, %s4484_s21 }
  0xe7   : > { %p4487_p9 = pnand %p4485_p3, %p5654_p7  ;;  %p4493_p10 = scmp.lt.u32.totalorder %s4484_s21, %s5044_s26 }
  0xe8   : > { %p4492_p11 = por %p4491_p5, %p4490_p6 }
  0xe9   : > { %p4488_p0 = pneg %p4487_p9 }
  0xea   : > { %p4494_p2 = por %p4493_p10, %p4492_p11 }
  0xec   : > { %p4495_p4 = pnand %p4494_p2, %p4488_p0 }
  0xee   : > { %4498 = shalt.err (!%p4495_p4)
}
  0xef   : > { %s4499_s14 = scalar_lea.vmem %s5078_s24, 8192  ;;  %p5655_p8 = pmov %p5654_p7 }
  0xf0   : > { %p4500_p13 = scmp.ne.s32.totalorder %s5078_s24, %s4499_s14  ;;  %s4663_s4 = smov [#allocation15]  }
  0xf1   : > { %s4504_s1 = sshll.u32 %s4663_s4, 4  ;;  %s4505_s1 = int_to_ptr.vmem [resolvable:$false] %s4504_s1 }
  0xf2   : > { %p4502_p1 = pnand %p4500_p13, %p5655_p8  ;;  %s4506_s22 = scalar_lea.vmem %s4505_s1, 16384 }
  0xf3   : > { %p4507_p7 = scmp.lt.s32.totalorder %s5078_s24, %s4505_s1  ;;  %p4508_p9 = scmp.lt.s32.totalorder %s4506_s22, %s4499_s14 }
  0xf4   : > { %p4503_p3 = pneg %p4502_p1 }
  0xf5   : > { %p4509_p6 = por %p4508_p9, %p4507_p7 }
  0xf7   : > { %p4510_p5 = pnand %p4509_p6, %p4503_p3 }
  0xf9   : > { %4513 = shalt.err (!%p4510_p5)
}
  0xfa   : > { %s5656_s5 = smov 8   ;;  %s5657_s7 = smov 128  }
  0xfb   : > { %3749 = dma.hbm_to_vmem [thread:$0]  (!%p4901_p12), %s5044_s26, 8192, %s5078_s24, %s4908_s13, %s5657_s7, %s5657_s7, %s5656_s5  }
  0xfc   : > { %s5658_s10 = sld [smem:[#allocation27_spill]] }
 0x102   : > { %p5659_p0 = scmp.ne.s32.totalorder %s5658_s10, 0 }
 0x103   : > { %s5110_s21 = sand.u32 (!%p5659_p0), 1, %s4624_s29   ;;  %p5660_p11 = scmp.ne.s32.totalorder (!%p5659_p0), %s5647_s15, 0 }
 0x104   : > { %510 = sbr.rel (%p5659_p0) target bundleno = 2757 (0xac5), region = 72  ;;  %s3387_s25 = sshll.u32 (!%p5659_p0), %s5110_s21, 5 }
 0x105   : > { %s513_s6 = scalar_lea.sflag (!%p5659_p0), [#allocation5], %s5110_s21  ;;  %s5114_s20 = scalar_lea.vmem (!%p5659_p0), [#allocation4], %s3387_s25 }
 0x10b   : > { %4587 = dma.done.wait (%p5660_p11), %s513_s6, 512  }
 0x10c   : > { %4589 = vsyncadd (%p5660_p11), %s513_s6, 4294966784  ;;  %p5661_p12 = scmp.eq.s32.totalorder %s4794_s19, 0 }
 0x10e   : > { %4591 = dma.done.wait (%p5661_p12), [#allocation8], 64   ;;  %p5662_p10 = pmov %p5661_p12 }
 0x110   : > { %4593 = vsyncadd (%p5662_p10), [#allocation8], 4294967232  ;;  %p5663_p2 = pmov %p5662_p10 }
 0x112   : > { %4595 = dma.done.wait (%p5663_p2), [#allocation11], 16384   ;;  %p5664_p4 = pmov %p5663_p2 }
 0x113   : > { %s5665_s13 = sld [smem:[#allocation22_spill]]  ;;  %s5666_s26 = sld [smem:[#allocation26_spill]] }
 0x114   : > { %4597 = vsyncadd (%p5664_p4), [#allocation11], 4294950912  ;;  %s537_s8 = sand.u32 1, %s4794_s19  }
 0x115   : > { %s538_s15 = scalar_lea.sflag [#allocation14], %s537_s8 }
 0x119   : > { %s539_s24 = sand.u32 1, %s5665_s13   ;;  %p5667_p13 = scmp.ne.s32.totalorder %s5666_s26, 0 }
 0x11a   : > { %s3392_s9 = sshll.u32 %s539_s24, 9 }
 0x11b   : > { %s5130_s2 = scalar_lea.vmem [#allocation13], %s3392_s9 }
 0x11c   : > { %4599 = dma.done.wait (%p5667_p13), %s538_s15, 16384  }
 0x11d   : > { %4601 = vsyncadd (%p5667_p13), %s538_s15, 4294950912  ;;  %s5136_s14 = scalar_lea.vmem [#allocation15], %s3392_s9  ;;  %s5138_s4 = scalar_lea.vmem [#allocation16], %s3387_s25 }
 0x11e   : > { %s5668_s1 = sld [smem:[#allocation24_spill]] }
 0x124   : > { %p3395_p8 = scmp.ne.s32.totalorder %s5668_s1, 0 }
 0x125   : > { %v5142_v0 = vld [vmem:[%s5114_s20] sm:$0xff] (!%p3395_p8)  ;;  %v5145_v1 = vld [vmem:[%s5114_s20 + $0x8] sm:$0xff] (!%p3395_p8)  ;;  %v5148_v2 = vld [vmem:[%s5114_s20 + $0x10] sm:$0xff] (!%p3395_p8)  ;;  %vm4665_vm0 = vmmov (!%p3395_p8), 0   ;;  %s5669_s5 = sld [smem:[#allocation34_spill]] (!%p3395_p8)  ;;  %vm1469_vm1 = vcmask (!%p3395_p8), 130048  }
 0x126   : > { %609 = sbr.rel (%p3395_p8) target bundleno = 2129 (0x851), region = 104  ;;  %v616_v3 = vadd.f32 (!%p3395_p8), %v5145_v1, %v5142_v0  ;;  %v5153_v4 = vld [vmem:[%s5114_s20 + $0x18] sm:$0xff] (!%p3395_p8)  ;;  %v3868_v6 = vld [vmem:[#allocation10 + $0x4] ss:$24 sps:$4 sm:$0xff] (!%p3395_p8)   ;;  %v3873_v9 = vld [vmem:[#allocation10 + $0x8] ss:$24 sps:$4 sm:$0xff] (!%p3395_p8)  }
 0x127   : > { %v619_v5 = vadd.f32 (!%p3395_p8), %v5153_v4, %v5148_v2  ;;  %v3870_v7 = vld [vmem:[#allocation10] ss:$24 sps:$4 sm:$0xff] (!%p3395_p8)   ;;  %v3871_v8 = vld [vmem:[#allocation10 + $0xc] ss:$24 sps:$4 sm:$0xff] (!%p3395_p8)   ;;  %1289 = vmatprep.subr.bf16.mxu0 (!%p3395_p8), %v3868_v6  ;;  %v3877_v11 = vld [vmem:[#allocation10 + $0x3c] ss:$24 sps:$4 sm:$0xff] (!%p3395_p8)  }
 0x128   : > { %617 = vadd.xlane.f32.xlu0 (!%p3395_p8), %v616_v3  ;;  %v3874_v10 = vld [vmem:[#allocation10 + $0x34] ss:$24 sps:$4 sm:$0xff] (!%p3395_p8)   ;;  %1332 = vmatprep.subr.bf16.mxu1 (!%p3395_p8), %v3871_v8  ;;  %v3876_v12 = vld [vmem:[#allocation10 + $0x30] ss:$24 sps:$4 sm:$0xff] (!%p3395_p8)   ;;  %v3880_v14 = vld [vmem:[#allocation10 + $0x64] ss:$24 sps:$4 sm:$0xff] (!%p3395_p8)  }
 0x129   : > { %1290 = vmatpush1.bf16.msra.mxu0 (!%p3395_p8), %v3870_v7  ;;  %1333 = vmatpush1.bf16.msra.mxu1 (!%p3395_p8), %v3873_v9  ;;  %v3879_v13 = vld [vmem:[#allocation10 + $0x38] ss:$24 sps:$4 sm:$0xff] (!%p3395_p8)   ;;  %v3883_v15 = vld [vmem:[#allocation10 + $0x6c] ss:$24 sps:$4 sm:$0xff] (!%p3395_p8)   ;;  %v3885_v17 = vld [vmem:[#allocation10 + $0x68] ss:$24 sps:$4 sm:$0xff] (!%p3395_p8)  }
 0x12a   : > { %1291 = vmatprep.subr.bf16.mxu0 (!%p3395_p8), %v3874_v10  ;;  %1334 = vmatprep.subr.bf16.mxu1 (!%p3395_p8), %v3877_v11  ;;  %v3882_v16 = vld [vmem:[#allocation10 + $0x60] ss:$24 sps:$4 sm:$0xff] (!%p3395_p8)   ;;  %v3886_v18 = vld [vmem:[#allocation10 + $0x94] ss:$24 sps:$4 sm:$0xff] (!%p3395_p8)   ;;  %v3888_v20 = vld [vmem:[#allocation10 + $0x90] ss:$24 sps:$4 sm:$0xff] (!%p3395_p8)  }
 0x12b   : > { %v3889_v19 = vld [vmem:[#allocation10 + $0x9c] ss:$24 sps:$4 sm:$0xff] (!%p3395_p8)   ;;  %v3891_v21 = vld [vmem:[#allocation10 + $0x98] ss:$24 sps:$4 sm:$0xff] (!%p3395_p8)   ;;  %v3895_v23 = vld [vmem:[#allocation10 + $0xcc] ss:$24 sps:$4 sm:$0xff] (!%p3395_p8)  }
 0x12c   : > { %620 = vadd.xlane.f32.xlu0 (!%p3395_p8), %v619_v5  ;;  %v3892_v22 = vld [vmem:[#allocation10 + $0xc4] ss:$24 sps:$4 sm:$0xff] (!%p3395_p8)   ;;  %v3894_v24 = vld [vmem:[#allocation10 + $0xc0] ss:$24 sps:$4 sm:$0xff] (!%p3395_p8)   ;;  %v3898_v26 = vld [vmem:[#allocation10 + $0xf4] ss:$24 sps:$4 sm:$0xff] (!%p3395_p8)  }
 0x12d   : > { %1292 = vmatpush1.bf16.msra.mxu0 %v3876_v12  ;;  %1335 = vmatpush1.bf16.msra.mxu1 %v3879_v13  ;;  %v3897_v25 = vld [vmem:[#allocation10 + $0xc8] ss:$24 sps:$4 sm:$0xff]   ;;  %v3901_v27 = vld [vmem:[#allocation10 + $0xfc] ss:$24 sps:$4 sm:$0xff]   ;;  %v3903_v29 = vld [vmem:[#allocation10 + $0xf8] ss:$24 sps:$4 sm:$0xff]  }
 0x12e   : > { %1293 = vmatprep.subr.bf16.mxu0 %v3880_v14  ;;  %1336 = vmatprep.subr.bf16.mxu1 %v3883_v15  ;;  %v3900_v28 = vld [vmem:[#allocation10 + $0xf0] ss:$24 sps:$4 sm:$0xff]   ;;  %v3904_v30 = vld [vmem:[#allocation10 + $0x124] ss:$24 sps:$4 sm:$0xff]   ;;  %v3906_v32 = vld [vmem:[#allocation10 + $0x120] ss:$24 sps:$4 sm:$0xff]  }
 0x12f   : > { %v3907_v31 = vld [vmem:[#allocation10 + $0x12c] ss:$24 sps:$4 sm:$0xff]   ;;  %v3909_v33 = vld [vmem:[#allocation10 + $0x128] ss:$24 sps:$4 sm:$0xff]   ;;  %v3913_v35 = vld [vmem:[#allocation10 + $0x15c] ss:$24 sps:$4 sm:$0xff]  }
 0x130   : > { %v3910_v34 = vld [vmem:[#allocation10 + $0x154] ss:$24 sps:$4 sm:$0xff]   ;;  %v3912_v36 = vld [vmem:[#allocation10 + $0x150] ss:$24 sps:$4 sm:$0xff]   ;;  %v3916_v38 = vld [vmem:[#allocation10 + $0x184] ss:$24 sps:$4 sm:$0xff]  }
 0x131   : > { %1294 = vmatpush1.bf16.msra.mxu0 %v3882_v16  ;;  %1337 = vmatpush1.bf16.msra.mxu1 %v3885_v17  ;;  %v3915_v37 = vld [vmem:[#allocation10 + $0x158] ss:$24 sps:$4 sm:$0xff]   ;;  %v3919_v39 = vld [vmem:[#allocation10 + $0x18c] ss:$24 sps:$4 sm:$0xff]   ;;  %v3921_v41 = vld [vmem:[#allocation10 + $0x188] ss:$24 sps:$4 sm:$0xff]  }
 0x132   : > { %1295 = vmatprep.subr.bf16.mxu0 %v3886_v18  ;;  %1338 = vmatprep.subr.bf16.mxu1 %v3889_v19  ;;  %v3918_v40 = vld [vmem:[#allocation10 + $0x180] ss:$24 sps:$4 sm:$0xff]   ;;  %v3922_v42 = vld [vmem:[#allocation10 + $0x1b4] ss:$24 sps:$4 sm:$0xff]   ;;  %v3924_v57 = vld [vmem:[#allocation10 + $0x1b0] ss:$24 sps:$4 sm:$0xff]  }
 0x133   : > { %v3925_v58 = vld [vmem:[#allocation10 + $0x1bc] ss:$24 sps:$4 sm:$0xff]   ;;  %v3927_v59 = vld [vmem:[#allocation10 + $0x1b8] ss:$24 sps:$4 sm:$0xff]   ;;  %v3931_v62 = vld [vmem:[#allocation10 + $0x1ec] ss:$24 sps:$4 sm:$0xff]  }
 0x134   : > { %v3928_v60 = vld [vmem:[#allocation10 + $0x1e4] ss:$24 sps:$4 sm:$0xff]   ;;  %v3930_v61 = vld [vmem:[#allocation10 + $0x1e0] ss:$24 sps:$4 sm:$0xff]   ;;  %v3946_v8 = vld [vmem:[#allocation10 + $0x274] ss:$24 sps:$4 sm:$0xff]  }
 0x135   : > { %1296 = vmatpush1.bf16.msra.mxu0 %v3888_v20  ;;  %1339 = vmatpush1.bf16.msra.mxu1 %v3891_v21  ;;  %v3933_v63 = vld [vmem:[#allocation10 + $0x1e8] ss:$24 sps:$4 sm:$0xff]   ;;  %v3939_v3 = vld [vmem:[#allocation10 + $0x218] ss:$24 sps:$4 sm:$0xff]   ;;  %v3943_v6 = vld [vmem:[#allocation10 + $0x24c] ss:$24 sps:$4 sm:$0xff]  }
 0x136   : > { %1297 = vmatprep.subr.bf16.mxu0 %v3892_v22  ;;  %1340 = vmatprep.subr.bf16.mxu1 %v3895_v23  ;;  %v3942_v5 = vld [vmem:[#allocation10 + $0x240] ss:$24 sps:$4 sm:$0xff]   ;;  %v3949_v9 = vld [vmem:[#allocation10 + $0x27c] ss:$24 sps:$4 sm:$0xff]   ;;  %v3948_v10 = vld [vmem:[#allocation10 + $0x270] ss:$24 sps:$4 sm:$0xff]  }
 0x137   : > { %v3945_v7 = vld [vmem:[#allocation10 + $0x248] ss:$24 sps:$4 sm:$0xff]   ;;  %v3951_v11 = vld [vmem:[#allocation10 + $0x278] ss:$24 sps:$4 sm:$0xff]   ;;  %v3952_v12 = vld [vmem:[#allocation10 + $0x2a4] ss:$24 sps:$4 sm:$0xff]  }
 0x138   : > { %v3955_v13 = vld [vmem:[#allocation10 + $0x2ac] ss:$24 sps:$4 sm:$0xff]   ;;  %v3954_v14 = vld [vmem:[#allocation10 + $0x2a0] ss:$24 sps:$4 sm:$0xff]   ;;  %v3961_v17 = vld [vmem:[#allocation10 + $0x2dc] ss:$24 sps:$4 sm:$0xff]  }
 0x139   : > { %1298 = vmatpush1.bf16.msra.mxu0 %v3894_v24  ;;  %1341 = vmatpush1.bf16.msra.mxu1 %v3897_v25  ;;  %v3957_v15 = vld [vmem:[#allocation10 + $0x2a8] ss:$24 sps:$4 sm:$0xff]   ;;  %v3958_v16 = vld [vmem:[#allocation10 + $0x2d4] ss:$24 sps:$4 sm:$0xff]   ;;  %v3963_v19 = vld [vmem:[#allocation10 + $0x2d8] ss:$24 sps:$4 sm:$0xff]   ;;  %v650_v25 = vlaneseq }
 0x13a   : > { %1299 = vmatprep.subr.bf16.mxu0 %v3898_v26  ;;  %1342 = vmatprep.subr.bf16.mxu1 %v3901_v27  ;;  %v3960_v18 = vld [vmem:[#allocation10 + $0x2d0] ss:$24 sps:$4 sm:$0xff]   ;;  %v3966_v20 = vld [vmem:[#allocation10 + $0x14] ss:$24 sps:$4 sm:$0xff]   ;;  %s5670_s25 = sld [smem:[#allocation36_spill]]  ;;  %s5671_s26 = sld [smem:[#allocation41_spill]] }
 0x13b   : > { %s5672_s24 = sld [smem:[#allocation37_spill]]  ;;  %s5673_s1 = sld [smem:[#allocation38_spill]] }
 0x13d   : > { %1300 = vmatpush1.bf16.msra.mxu0 %v3900_v28  ;;  %1343 = vmatpush1.bf16.msra.mxu1 %v3903_v29  ;;  %v5177_v28 = vshrl.u32 %v650_v25, 7 }
 0x13e   : > { %1301 = vmatprep.subr.bf16.mxu0 %v3904_v30  ;;  %1344 = vmatprep.subr.bf16.mxu1 %v3907_v31  ;;  %v614_v31 = vld [vmem:[#allocation7] sm:$0x3] }
 0x13f   : > { %v5180_v29 = vsub.s32 1, %v5177_v28  ;;  %v5183_v30 = vsub.s32 0, %v5177_v28 }
 0x141   : > { %1302 = vmatpush1.bf16.msra.mxu0 %v3906_v32  ;;  %1345 = vmatpush1.bf16.msra.mxu1 %v3909_v33  ;;  %v615_v33 = vld [vmem:[#allocation9] sm:$0x3] }
 0x142   : > { %1303 = vmatprep.subr.bf16.mxu0 %v3910_v34  ;;  %1346 = vmatprep.subr.bf16.mxu1 %v3913_v35  ;;  %v657_v35 = vrot.slane %v614_v31, %v5180_v29 }
 0x145   : > { %1304 = vmatpush1.bf16.msra.mxu0 %v3912_v36  ;;  %1347 = vmatpush1.bf16.msra.mxu1 %v3915_v37  ;;  %v653_v37 = vrot.slane %v614_v31, %v5183_v30 }
 0x146   : > { %1305 = vmatprep.subr.bf16.mxu0 %v3916_v38  ;;  %1348 = vmatprep.subr.bf16.mxu1 %v3919_v39  ;;  %v672_v39 = vrot.slane %v615_v33, %v5180_v29 }
 0x149   : > { %1306 = vmatpush1.bf16.msra.mxu0 %v3918_v40  ;;  %1349 = vmatpush1.bf16.msra.mxu1 %v3921_v41  ;;  %v668_v40 = vrot.slane %v615_v33, %v5183_v30 }
 0x14a   : > { %1307 = vmatprep.subr.bf16.mxu0 %v3922_v42  ;;  %1350 = vmatprep.subr.bf16.mxu1 %v3925_v58  ;;  %v3975_v58 = vld [vmem:[#allocation10 + $0xa4] ss:$24 sps:$4 sm:$0xff]  }
 0x14d   : > { %1308 = vmatpush1.bf16.msra.mxu0 %v3924_v57  ;;  %1351 = vmatpush1.bf16.msra.mxu1 %v3927_v59  ;;  %v3970_v57 = vld [vmem:[#allocation10 + $0x70] ss:$24 sps:$4 sm:$0xff]   ;;  %v3973_v59 = vld [vmem:[#allocation10 + $0xa0] ss:$24 sps:$4 sm:$0xff]  }
 0x14e   : > { %1309 = vmatprep.subr.bf16.mxu0 %v3928_v60  ;;  %1352 = vmatprep.subr.bf16.mxu1 %v3931_v62  ;;  %v3978_v60 = vld [vmem:[#allocation10 + $0xd4] ss:$24 sps:$4 sm:$0xff]   ;;  %v3981_v62 = vld [vmem:[#allocation10 + $0x104] ss:$24 sps:$4 sm:$0xff]  }
 0x151   : > { %1310 = vmatpush1.bf16.msra.mxu0 %v3930_v61  ;;  %1353 = vmatpush1.bf16.msra.mxu1 %v3933_v63  ;;  %v3976_v61 = vld [vmem:[#allocation10 + $0xd0] ss:$24 sps:$4 sm:$0xff]   ;;  %v3979_v63 = vld [vmem:[#allocation10 + $0x100] ss:$24 sps:$4 sm:$0xff]  }
 0x1b5   : > { %v618_v43 = vpop.xlane.xlu0 %617 }
 0x1b6   : > { %v623_v44 = vmul.f32 0.00390625, %v618_v43 }
 0x1b8   : > { %v5158_v45 = vsub.f32 %v5142_v0, %v623_v44  ;;  %v5161_v46 = vsub.f32 %v5145_v1, %v623_v44  ;;  %v3934_v0 = vld [vmem:[#allocation10 + $0x214] ss:$24 sps:$4 sm:$0xff]   ;;  %v3936_v1 = vld [vmem:[#allocation10 + $0x210] ss:$24 sps:$4 sm:$0xff]  }
 0x1b9   : > { %v621_v47 = vpop.xlane.xlu0 %620  ;;  %1311 = vmatprep.subr.bf16.mxu0 %v3934_v0  ;;  %v3984_v0 = vld [vmem:[#allocation10 + $0x134] ss:$24 sps:$4 sm:$0xff]  }
 0x1ba   : > { %v624_v48 = vmul.f32 0.00390625, %v621_v47  ;;  %v629_v49 = vmul.f32 %v5158_v45, %v5158_v45  ;;  %v630_v50 = vmul.f32 %v5161_v46, %v5161_v46  ;;  %1312 = vmatpush1.bf16.msra.mxu0 %v3936_v1  ;;  %v3982_v1 = vld [vmem:[#allocation10 + $0x130] ss:$24 sps:$4 sm:$0xff]  }
 0x1bc   : > { %v5168_v51 = vsub.f32 %v5148_v2, %v624_v48  ;;  %v5171_v52 = vsub.f32 %v5153_v4, %v624_v48  ;;  %v633_v53 = vadd.f32 %v630_v50, %v629_v49  ;;  %v3937_v2 = vld [vmem:[#allocation10 + $0x21c] ss:$24 sps:$4 sm:$0xff]  }
 0x1bd   : > { %1354 = vmatprep.subr.bf16.mxu1 %v3937_v2  ;;  %v3940_v4 = vld [vmem:[#allocation10 + $0x244] ss:$24 sps:$4 sm:$0xff]  }
 0x1be   : > { %634 = vadd.xlane.f32.xlu1 %v633_v53  ;;  %v631_v54 = vmul.f32 %v5168_v51, %v5168_v51  ;;  %v632_v55 = vmul.f32 %v5171_v52, %v5171_v52  ;;  %1355 = vmatpush1.bf16.msra.mxu1 %v3939_v3  ;;  %v3987_v2 = vld [vmem:[#allocation10 + $0x164] ss:$24 sps:$4 sm:$0xff]   ;;  %v3985_v3 = vld [vmem:[#allocation10 + $0x160] ss:$24 sps:$4 sm:$0xff]  }
 0x1bf   : > { %1313 = vmatprep.subr.bf16.mxu0 %v3940_v4  ;;  %1356 = vmatprep.subr.bf16.mxu1 %v3943_v6  ;;  %v3990_v4 = vld [vmem:[#allocation10 + $0x194] ss:$24 sps:$4 sm:$0xff]   ;;  %v3993_v6 = vld [vmem:[#allocation10 + $0x1c4] ss:$24 sps:$4 sm:$0xff]  }
 0x1c0   : > { %v636_v56 = vadd.f32 %v632_v55, %v631_v54  ;;  %1314 = vmatpush1.bf16.msra.mxu0 %v3942_v5  ;;  %v3964_v54 = vld [vmem:[#allocation10 + $0x10] ss:$24 sps:$4 sm:$0xff]  }
 0x1c1   : > { %1315 = vmatprep.subr.bf16.mxu0 %v3946_v8  ;;  %v3988_v5 = vld [vmem:[#allocation10 + $0x190] ss:$24 sps:$4 sm:$0xff]   ;;  %v3996_v8 = vld [vmem:[#allocation10 + $0x1f4] ss:$24 sps:$4 sm:$0xff]  }
 0x1c2   : > { %637 = vadd.xlane.f32.xlu1 %v636_v56  ;;  %1357 = vmatpush1.bf16.msra.mxu1 %v3945_v7  ;;  %v3969_v56 = vld [vmem:[#allocation10 + $0x44] ss:$24 sps:$4 sm:$0xff]   ;;  %v3991_v7 = vld [vmem:[#allocation10 + $0x1c0] ss:$24 sps:$4 sm:$0xff]  }
 0x1c3   : > { %1358 = vmatprep.subr.bf16.mxu1 %v3949_v9  ;;  %v3994_v9 = vld [vmem:[#allocation10 + $0x1f0] ss:$24 sps:$4 sm:$0xff]  }
 0x1c4   : > { %1316 = vmatpush1.bf16.msra.mxu0 %v3948_v10  ;;  %v3999_v10 = vld [vmem:[#allocation10 + $0x224] ss:$24 sps:$4 sm:$0xff]  }
 0x1c5   : > { %1317 = vmatprep.subr.bf16.mxu0 %v3952_v12  ;;  %v4002_v12 = vld [vmem:[#allocation10 + $0x254] ss:$24 sps:$4 sm:$0xff]  }
 0x1c6   : > { %1359 = vmatpush1.bf16.msra.mxu1 %v3951_v11  ;;  %v3997_v11 = vld [vmem:[#allocation10 + $0x220] ss:$24 sps:$4 sm:$0xff]  }
 0x1c7   : > { %1360 = vmatprep.subr.bf16.mxu1 %v3955_v13  ;;  %v4000_v13 = vld [vmem:[#allocation10 + $0x250] ss:$24 sps:$4 sm:$0xff]  }
 0x1c8   : > { %1318 = vmatpush1.bf16.msra.mxu0 %v3954_v14  ;;  %v4005_v14 = vld [vmem:[#allocation10 + $0x284] ss:$24 sps:$4 sm:$0xff]  }
 0x1c9   : > { %1319 = vmatprep.subr.bf16.mxu0 %v3958_v16  ;;  %v4008_v16 = vld [vmem:[#allocation10 + $0x2b4] ss:$24 sps:$4 sm:$0xff]  }
 0x1ca   : > { %1361 = vmatpush1.bf16.msra.mxu1 %v3957_v15  ;;  %v4003_v15 = vld [vmem:[#allocation10 + $0x280] ss:$24 sps:$4 sm:$0xff]  }
 0x1cb   : > { %1362 = vmatprep.subr.bf16.mxu1 %v3961_v17  ;;  %v4006_v17 = vld [vmem:[#allocation10 + $0x2b0] ss:$24 sps:$4 sm:$0xff]  }
 0x1cc   : > { %1320 = vmatpush1.bf16.msra.mxu0 %v3960_v18  ;;  %v4011_v18 = vld [vmem:[#allocation10 + $0x2e4] ss:$24 sps:$4 sm:$0xff]  }
 0x1cd   : > { %1375 = vmatprep.subr.bf16.mxu0 %v3966_v20  ;;  %v4664_v20 = vmov 0.0  }
 0x1ce   : > { %1363 = vmatpush1.bf16.msra.mxu1 %v3963_v19  ;;  %v4009_v19 = vld [vmem:[#allocation10 + $0x2e0] ss:$24 sps:$4 sm:$0xff]  }
 0x1cf   : > { %3687 = vmatprep.subr.bf16.mxu1 %v4664_v20 }
 0x24b   : > { %v635_v21 = vpop.xlane.xlu1 %634 }
 0x24c   : > { %v639_v22 = vmul.f32 0.00390625, %v635_v21  ;;  %v777_v21 = vld [vmem:[%s5669_s5] sm:$0x3f] }
 0x24d   : > { %v786_v25 = vrot.slane %v777_v21, %v5180_v29 }
 0x24e   : > { %v641_v23 = vadd.f32 0.02, %v639_v22  ;;  %v789_v22 = vsub.s32 2, %v5177_v28 }
 0x24f   : > { %v638_v24 = vpop.xlane.xlu1 %637 }
 0x250   : > { %4060 = vrsqrt.f32 %v641_v23  ;;  %v640_v26 = vmul.f32 0.00390625, %v638_v24  ;;  %v793_v23 = vsub.s32 3, %v5177_v28  ;;  %v782_v24 = vrot.slane %v777_v21, %v5183_v30 }
 0x252   : > { %v642_v27 = vadd.f32 0.02, %v640_v26  ;;  %v790_v26 = vrot.slane %v777_v21, %v789_v22 }
 0x254   : > { %4062 = vrsqrt.f32 %v642_v27 }
 0x25a   : > { %v4061_v32 = vpop.eup %4060 }
 0x25b   : > { %v646_v34 = vmul.f32 %v4061_v32, %v5161_v46  ;;  %v645_v36 = vmul.f32 %v4061_v32, %v5158_v45  ;;  %v794_v32 = vrot.slane %v777_v21, %v793_v23 }
 0x25d   : > { %v661_v42 = vmul.f32 %v657_v35, %v646_v34  ;;  %v660_v44 = vmul.f32 %v653_v37, %v645_v36 }
 0x25e   : > { %v4063_v38 = vpop.eup %4062 }
 0x25f   : > { %v648_v41 = vmul.f32 %v4063_v38, %v5171_v52  ;;  %v647_v43 = vmul.f32 %v4063_v38, %v5168_v51  ;;  %v676_v46 = vadd.f32 %v672_v39, %v661_v42  ;;  %v675_v50 = vadd.f32 %v668_v40, %v660_v44  ;;  %v3967_v51 = vld [vmem:[#allocation10 + $0x40] ss:$24 sps:$4 sm:$0xff]   ;;  %v3972_v52 = vld [vmem:[#allocation10 + $0x74] ss:$24 sps:$4 sm:$0xff]  }
 0x261   : > { %v663_v47 = vmul.f32 %v657_v35, %v648_v41  ;;  %v662_v48 = vmul.f32 %v653_v37, %v647_v43 }
 0x263   : > { %v678_v49 = vadd.f32 %v672_v39, %v663_v47  ;;  %v677_v53 = vadd.f32 %v668_v40, %v662_v48 }
 0x265   : > { %v680_v45 = vpack.c.bf16 %v678_v49, %v676_v46  ;;  %v5193_v55 = vpack.c.bf16 %v677_v53, %v675_v50 }
 0x267   : > { %1321 = vmatprep.mubr.bf16.mxu0 %v680_v45  ;;  %1364 = vmatprep.mubr.bf16.mxu1 %v680_v45 }
 0x268   : > { %1322 = vmatmul.mubr.bf16.vlgmr.msra.gmra.mrb[0].mxu0 %v5193_v55  ;;  %1365 = vmatmul.mubr.bf16.vlgmr.msra.gmra.mrb[0].mxu1 %v5193_v55 }
 0x269   : > { %1376 = vmatpush1.bf16.msra.mxu0 %v3964_v54  ;;  %1407 = vmatprep.mubr.bf16.mxu0 %v680_v45 }
 0x26a   : > { %1377 = vmatprep.subr.bf16.mxu0 %v3969_v56  ;;  %3689 = vmatprep.mubr.msk.bf16.mxu1 %vm4665_vm0, %v4664_v20 }
 0x26d   : > { %1378 = vmatpush1.bf16.msra.mxu0 %v3967_v51  ;;  %v797_v51 = vsub.s32 4, %v5177_v28 }
 0x26e   : > { %1379 = vmatprep.subr.bf16.mxu0 %v3972_v52  ;;  %v801_v52 = vsub.s32 5, %v5177_v28 }
 0x271   : > { %1380 = vmatpush1.bf16.msra.mxu0 %v3970_v57  ;;  %v798_v57 = vrot.slane %v777_v21, %v797_v51  ;;  %v4015_v51 = vld [vmem:[#allocation12 + $0x10] ss:$8 sps:$4 sm:$0xff]  }
 0x272   : > { %1381 = vmatprep.subr.bf16.mxu0 %v3975_v58 }
 0x275   : > { %1382 = vmatpush1.bf16.msra.mxu0 %v3973_v59  ;;  %v802_v59 = vrot.slane %v777_v21, %v801_v52 }
 0x276   : > { %1383 = vmatprep.subr.bf16.mxu0 %v3978_v60 }
 0x279   : > { %1384 = vmatpush1.bf16.msra.mxu0 %v3976_v61 }
 0x27a   : > { %1385 = vmatprep.subr.bf16.mxu0 %v3981_v62 }
 0x27d   : > { %1386 = vmatpush1.bf16.msra.mxu0 %v3979_v63 }
 0x27e   : > { %1387 = vmatprep.subr.bf16.mxu0 %v3984_v0 }
 0x281   : > { %1388 = vmatpush1.bf16.msra.mxu0 %v3982_v1 }
 0x282   : > { %1389 = vmatprep.subr.bf16.mxu0 %v3987_v2 }
 0x285   : > { %1390 = vmatpush1.bf16.msra.mxu0 %v3985_v3 }
 0x286   : > { %1391 = vmatprep.subr.bf16.mxu0 %v3990_v4 }
 0x289   : > { %1392 = vmatpush1.bf16.msra.mxu0 %v3988_v5 }
 0x28a   : > { %1393 = vmatprep.subr.bf16.mxu0 %v3993_v6 }
 0x28d   : > { %1394 = vmatpush1.bf16.msra.mxu0 %v3991_v7 }
 0x28e   : > { %1395 = vmatprep.subr.bf16.mxu0 %v3996_v8 }
 0x291   : > { %1396 = vmatpush1.bf16.msra.mxu0 %v3994_v9 }
 0x292   : > { %1397 = vmatprep.subr.bf16.mxu0 %v3999_v10 }
 0x295   : > { %1398 = vmatpush1.bf16.msra.mxu0 %v3997_v11 }
 0x296   : > { %1399 = vmatprep.subr.bf16.mxu0 %v4002_v12 }
 0x299   : > { %1400 = vmatpush1.bf16.msra.mxu0 %v4000_v13 }
 0x29a   : > { %1401 = vmatprep.subr.bf16.mxu0 %v4005_v14 }
 0x29d   : > { %1402 = vmatpush1.bf16.msra.mxu0 %v4003_v15 }
 0x29e   : > { %1403 = vmatprep.subr.bf16.mxu0 %v4008_v16 }
 0x2a1   : > { %1404 = vmatpush1.bf16.msra.mxu0 %v4006_v17 }
 0x2a2   : > { %1405 = vmatprep.subr.bf16.mxu0 %v4011_v18 }
 0x2a5   : > { %1406 = vmatpush1.bf16.msra.mxu0 %v4009_v19 }
 0x2a6   : > { %3675 = vmatprep.subr.bf16.mxu0 %v4664_v20 }
 0x2a8   : > { %1408 = vmatmul.mubr.bf16.vlgmr.msra.gmra.mrb[4].mxu0 %v5193_v55 }
 0x2a9   : > { %3677 = vmatprep.mubr.msk.bf16.mxu0 %vm4665_vm0, %v4664_v20 }
 0x33b   : > { %v1323_v27 = vpop.f32.mrb[0].mxu0  ;;  %v1366_v31 = vpop.f32.mrb[0].mxu1 }
 0x33c   : > { %v1324_v33 = vadd.f32 %v1323_v27, %v782_v24  ;;  %v1325_v34 = vpop.f32.mrb[1].mxu0  ;;  %v1368_v35 = vpop.f32.mrb[1].mxu1  ;;  %v1367_v39 = vadd.f32 %v1366_v31, %v790_v26 }
 0x33d   : > { %v1326_v36 = vadd.f32 %v1325_v34, %v786_v25  ;;  %v1327_v37 = vpop.f32.mrb[2].mxu0  ;;  %v1370_v38 = vpop.f32.mrb[2].mxu1  ;;  %v1369_v44 = vadd.f32 %v1368_v35, %v794_v32 }
 0x33e   : > { %v1328_v40 = vadd.f32 %v1327_v37, %v782_v24  ;;  %v1371_v41 = vadd.f32 %v1370_v38, %v790_v26  ;;  %v1329_v42 = vpop.f32.mrb[3].mxu0  ;;  %v1372_v43 = vpop.f32.mrb[3].mxu1  ;;  %v1418_v46 = vmul.f32 0.088388346, %v1324_v33 }
 0x33f   : > { %v1330_v47 = vadd.f32 %v1329_v42, %v786_v25  ;;  %v1373_v48 = vadd.f32 %v1372_v43, %v794_v32  ;;  %v1419_v53 = vmul.f32 0.088388346, %v1326_v36 }
 0x340   : > { %v1420_v49 = vmul.f32 0.088388346, %v1328_v40  ;;  %v1424_v50 = vpack.c.bf16 %v1371_v41, %v1367_v39  ;;  %v4014_v39 = vld [vmem:[#allocation12 + $0x4] ss:$8 sps:$4 sm:$0xff]  }
 0x341   : > { %v1421_v45 = vmul.f32 0.088388346, %v1330_v47  ;;  %v1425_v54 = vpack.c.bf16 %v1373_v48, %v1369_v44 }
 0x342   : > { %v1422_v55 = vpack.c.bf16 %v1420_v49, %v1418_v46  ;;  %3676 = vmatpush3.bf16.xpose.msra.mxu0 %v1424_v50  ;;  %v4012_v50 = vld [vmem:[#allocation12] ss:$8 sps:$4 sm:$0xff]  }
 0x343   : > { %v1423_v56 = vpack.c.bf16 %v1421_v45, %v1419_v53  ;;  %3688 = vmatpush3.bf16.xpose.msra.mxu1 %v1425_v54  ;;  %3681 = vmatprep.subr.bf16.mxu0 %v4664_v20  ;;  %v4017_v45 = vld [vmem:[#allocation12 + $0x14] ss:$8 sps:$4 sm:$0xff]  }
 0x344   : > { %3693 = vmatprep.subr.bf16.mxu1 %v4664_v20 }
 0x349   : > { %3678 = vmatmul.mubr.bf16.vlgmr.msra.gmra.mrb[8].mxu0 %v1422_v55 }
 0x34a   : > { %3690 = vmatmul.mubr.bf16.vlgmr.msra.gmra.mrb[4].mxu1 %v1423_v56  ;;  %3683 = vmatprep.mubr.msk.bf16.mxu0 %vm4665_vm0, %v4664_v20 }
 0x34b   : > { %3695 = vmatprep.mubr.msk.bf16.mxu1 %vm4665_vm0, %v4664_v20 }
 0x37b   : > { %v1409_v58 = vpop.f32.mrb[4].mxu0 }
 0x37c   : > { %v1411_v60 = vpop.f32.mrb[5].mxu0  ;;  %v1410_v62 = vadd.f32 %v1409_v58, %v798_v57  ;;  %v4018_v58 = vld [vmem:[#allocation12 + $0x20] ss:$8 sps:$4 sm:$0xff]  }
 0x37d   : > { %v1413_v61 = vpop.f32.mrb[6].mxu0  ;;  %v1412_v1 = vadd.f32 %v1411_v60, %v802_v59  ;;  %v4021_v60 = vld [vmem:[#allocation12 + $0x30] ss:$8 sps:$4 sm:$0xff]  }
 0x37e   : > { %v1414_v63 = vadd.f32 %v1413_v61, %v798_v57  ;;  %v1415_v0 = vpop.f32.mrb[7].mxu0  ;;  %v4020_v57 = vld [vmem:[#allocation12 + $0x24] ss:$8 sps:$4 sm:$0xff]  }
 0x37f   : > { %v1416_v2 = vadd.f32 %v1415_v0, %v802_v59  ;;  %v4023_v59 = vld [vmem:[#allocation12 + $0x34] ss:$8 sps:$4 sm:$0xff]   ;;  %v4026_v61 = vld [vmem:[#allocation12 + $0x44] ss:$8 sps:$4 sm:$0xff]   ;;  %v4027_v0 = vld [vmem:[#allocation12 + $0x50] ss:$8 sps:$4 sm:$0xff]  }
 0x380   : > { %v1426_v3 = vpack.c.bf16 %v1414_v63, %v1410_v62  ;;  %v4024_v62 = vld [vmem:[#allocation12 + $0x40] ss:$8 sps:$4 sm:$0xff]   ;;  %v4029_v63 = vld [vmem:[#allocation12 + $0x54] ss:$8 sps:$4 sm:$0xff]  }
 0x381   : > { %v1427_v4 = vpack.c.bf16 %v1416_v2, %v1412_v1  ;;  %v4032_v1 = vld [vmem:[#allocation12 + $0x64] ss:$8 sps:$4 sm:$0xff]   ;;  %v4030_v2 = vld [vmem:[#allocation12 + $0x60] ss:$8 sps:$4 sm:$0xff]  }
 0x382   : > { %3682 = vmatpush3.bf16.msra.mxu0 %v1426_v3  ;;  %v4035_v3 = vld [vmem:[#allocation12 + $0x74] ss:$8 sps:$4 sm:$0xff]  }
 0x383   : > { %3694 = vmatpush3.bf16.msra.mxu1 %v1427_v4  ;;  %v4033_v4 = vld [vmem:[#allocation12 + $0x70] ss:$8 sps:$4 sm:$0xff]  }
 0x384   : > { %1855 = vmatprep.subr.bf16.mxu1 %v4014_v39 }
 0x41c   : > { %v1462_v5 = vpop.f32.mrb[8].mxu0 }
 0x41d   : > { %v3679_v6 = vpop.f32.mrb[9].mxu0  ;;  %v1573_v7 = vpop.f32.mrb[4].mxu1  ;;  %v1470_v14 = vsel %vm1469_vm1, %v1462_v5, -inf }
 0x41e   : > { %v1465_v8 = vpop.f32.mrb[10].mxu0  ;;  %v3691_v28 = vpop.f32.mrb[5].mxu1  ;;  %v1580_v9 = vsel %vm1469_vm1, %v1573_v7, -inf  ;;  %v4036_v6 = vld [vmem:[#allocation12 + $0x80] ss:$8 sps:$4 sm:$0xff]  }
 0x41f   : > { %1581 = vmax.xlane.f32.xlu0 %v1580_v9  ;;  %v3680_v10 = vpop.f32.mrb[11].mxu0  ;;  %v1576_v11 = vpop.f32.mrb[6].mxu1  ;;  %v1473_v15 = vsel %vm1469_vm1, %v1465_v8, -inf  ;;  %v4044_v28 = vld [vmem:[#allocation12 + $0xa4] ss:$8 sps:$4 sm:$0xff]  }
 0x420   : > { %v3692_v12 = vpop.f32.mrb[7].mxu1  ;;  %v1583_v13 = vsel %vm1469_vm1, %v1576_v11, -inf  ;;  %v4042_v9 = vld [vmem:[#allocation12 + $0xa0] ss:$8 sps:$4 sm:$0xff]   ;;  %v4047_v10 = vld [vmem:[#allocation12 + $0xb4] ss:$8 sps:$4 sm:$0xff]  }
 0x421   : > { %1584 = vmax.xlane.f32.xlu1 %v1583_v13  ;;  %v4050_v12 = vld [vmem:[#allocation12 + $0xc4] ss:$8 sps:$4 sm:$0xff]   ;;  %v4048_v13 = vld [vmem:[#allocation12 + $0xc0] ss:$8 sps:$4 sm:$0xff]  }
 0x423   : > { %1471 = vmax.xlane.f32.xlu0 %v1470_v14  ;;  %v4053_v14 = vld [vmem:[#allocation12 + $0xd4] ss:$8 sps:$4 sm:$0xff]  }
 0x425   : > { %1474 = vmax.xlane.f32.xlu1 %v1473_v15  ;;  %v4051_v15 = vld [vmem:[#allocation12 + $0xd0] ss:$8 sps:$4 sm:$0xff]  }
 0x4ac   : > { %v1582_v16 = vpop.xlane.xlu0 %1581 }
 0x4ad   : > { %v1586_v17 = vsub.f32 %v1573_v7, %v1582_v16  ;;  %v4041_v7 = vld [vmem:[#allocation12 + $0x94] ss:$8 sps:$4 sm:$0xff]   ;;  %v4056_v16 = vld [vmem:[#allocation12 + $0xe4] ss:$8 sps:$4 sm:$0xff]  }
 0x4ae   : > { %v1585_v18 = vpop.xlane.xlu1 %1584 }
 0x4af   : > { %v1588_v19 = vmul.f32 1.442695, %v1586_v17  ;;  %v1587_v20 = vsub.f32 %v1576_v11, %v1585_v18  ;;  %v4045_v11 = vld [vmem:[#allocation12 + $0xb0] ss:$8 sps:$4 sm:$0xff]   ;;  %v4054_v17 = vld [vmem:[#allocation12 + $0xe0] ss:$8 sps:$4 sm:$0xff]  }
 0x4b0   : > { %v1472_v21 = vpop.xlane.xlu0 %1471  ;;  %v4059_v18 = vld [vmem:[#allocation12 + $0xf4] ss:$8 sps:$4 sm:$0xff]  }
 0x4b1   : > { %4064 = vpow2.f32 %v1588_v19  ;;  %v1590_v22 = vmul.f32 1.442695, %v1587_v20  ;;  %v1476_v23 = vsub.f32 %v1462_v5, %v1472_v21  ;;  %v4038_v5 = vld [vmem:[#allocation12 + $0x84] ss:$8 sps:$4 sm:$0xff]   ;;  %v4057_v19 = vld [vmem:[#allocation12 + $0xf0] ss:$8 sps:$4 sm:$0xff]  }
 0x4b2   : > { %v1475_v24 = vpop.xlane.xlu1 %1474 }
 0x4b3   : > { %4066 = vpow2.f32 %v1590_v22  ;;  %v1478_v25 = vmul.f32 1.442695, %v1476_v23  ;;  %v1477_v26 = vsub.f32 %v1465_v8, %v1475_v24  ;;  %v4039_v8 = vld [vmem:[#allocation12 + $0x90] ss:$8 sps:$4 sm:$0xff]  }
 0x4b5   : > { %4068 = vpow2.f32 %v1478_v25  ;;  %v1480_v27 = vmul.f32 1.442695, %v1477_v26 }
 0x4b7   : > { %4070 = vpow2.f32 %v1480_v27 }
 0x4bb   : > { %v4065_v31 = vpop.eup %4064 }
 0x4bc   : > { %v1592_v32 = vsel %vm1469_vm1, %v4065_v31, 0.0 }
 0x4bd   : > { %v4067_v33 = vpop.eup %4066  ;;  %1593 = vadd.xlane.f32.xlu0 %v1592_v32 }
 0x4be   : > { %v1595_v34 = vsel %vm1469_vm1, %v4067_v33, 0.0 }
 0x4bf   : > { %v4069_v35 = vpop.eup %4068  ;;  %1596 = vadd.xlane.f32.xlu1 %v1595_v34 }
 0x4c0   : > { %v1482_v36 = vsel %vm1469_vm1, %v4069_v35, 0.0 }
 0x4c1   : > { %v4071_v37 = vpop.eup %4070  ;;  %1483 = vadd.xlane.f32.xlu0 %v1482_v36 }
 0x4c2   : > { %v1485_v38 = vsel %vm1469_vm1, %v4071_v37, 0.0 }
 0x4c3   : > { %1486 = vadd.xlane.f32.xlu1 %v1485_v38 }
 0x54a   : > { %v1594_v40 = vpop.xlane.xlu0 %1593 }
 0x54b   : > { %4072 = vrcp.f32 %v1594_v40 }
 0x54c   : > { %v1597_v41 = vpop.xlane.xlu1 %1596 }
 0x54d   : > { %4074 = vrcp.f32 %v1597_v41 }
 0x54e   : > { %v1484_v42 = vpop.xlane.xlu0 %1483 }
 0x54f   : > { %4076 = vrcp.f32 %v1484_v42 }
 0x550   : > { %v1487_v43 = vpop.xlane.xlu1 %1486 }
 0x551   : > { %4078 = vrcp.f32 %v1487_v43 }
 0x555   : > { %v4073_v44 = vpop.eup %4072 }
 0x556   : > { %v1600_v48 = vmul.f32 %v4073_v44, %v4065_v31  ;;  %v4084_v44 = vld [vmem:[%s5114_s20] sm:$0xff] }
 0x557   : > { %v4075_v47 = vpop.eup %4074 }
 0x558   : > { %v1601_v46 = vmul.f32 %v4075_v47, %v4067_v33  ;;  %v1683_v33 = vld [vmem:[%s5670_s25] sm:$0x3] }
 0x559   : > { %v4077_v49 = vpop.eup %4076  ;;  %v1688_v34 = vrot.slane %v1683_v33, %v5183_v30  ;;  %v1692_v36 = vrot.slane %v1683_v33, %v5180_v29 }
 0x55a   : > { %v1602_v53 = vpack.c.bf16 %v1601_v46, %v1600_v48  ;;  %v1490_v55 = vmul.f32 %v4077_v49, %v4069_v35  ;;  %v1970_v35 = vld [vmem:[%s5671_s26] sm:$0x3]  ;;  %v4085_v49 = vld [vmem:[%s5114_s20 + $0x8] sm:$0xff] }
 0x55b   : > { %v4079_v54 = vpop.eup %4078  ;;  %v1975_v39 = vrot.slane %v1970_v35, %v5183_v30  ;;  %v1979_v42 = vrot.slane %v1970_v35, %v5180_v29 }
 0x55c   : > { %v1491_v56 = vmul.f32 %v4079_v54, %v4071_v37  ;;  %3696 = vmatmul.mubr.msk.bf16.vlgmr.msra.gmra.mrb[8].mxu1 %vm1469_vm1, %v1602_v53  ;;  %v4086_v54 = vld [vmem:[%s5114_s20 + $0x10] sm:$0xff] }
 0x55d   : > { %1856 = vmatpush1.bf16.msra.mxu1 %v4012_v50 }
 0x55e   : > { %v1492_v52 = vpack.c.bf16 %v1491_v56, %v1490_v55  ;;  %1857 = vmatprep.subr.bf16.mxu1 %v4017_v45 }
 0x560   : > { %3684 = vmatmul.mubr.msk.bf16.vlgmr.msra.gmra.mrb[12].mxu0 %vm1469_vm1, %v1492_v52 }
 0x561   : > { %1858 = vmatpush1.bf16.msra.mxu1 %v4015_v51  ;;  %v4087_v51 = vld [vmem:[%s5114_s20 + $0x18] sm:$0xff] }
 0x562   : > { %1859 = vmatprep.subr.bf16.mxu1 %v4020_v57 }
 0x565   : > { %1860 = vmatpush1.bf16.msra.mxu1 %v4018_v58 }
 0x566   : > { %1861 = vmatprep.subr.bf16.mxu1 %v4023_v59 }
 0x569   : > { %1862 = vmatpush1.bf16.msra.mxu1 %v4021_v60 }
 0x56a   : > { %1863 = vmatprep.subr.bf16.mxu1 %v4026_v61 }
 0x56d   : > { %1864 = vmatpush1.bf16.msra.mxu1 %v4024_v62 }
 0x56e   : > { %1865 = vmatprep.subr.bf16.mxu1 %v4029_v63 }
 0x571   : > { %1866 = vmatpush1.bf16.msra.mxu1 %v4027_v0 }
 0x572   : > { %1867 = vmatprep.subr.bf16.mxu1 %v4032_v1 }
 0x575   : > { %1868 = vmatpush1.bf16.msra.mxu1 %v4030_v2 }
 0x576   : > { %1869 = vmatprep.subr.bf16.mxu1 %v4035_v3 }
 0x579   : > { %1870 = vmatpush1.bf16.msra.mxu1 %v4033_v4 }
 0x57a   : > { %1871 = vmatprep.subr.bf16.mxu1 %v4038_v5 }
 0x57d   : > { %1872 = vmatpush1.bf16.msra.mxu1 %v4036_v6 }
 0x57e   : > { %1873 = vmatprep.subr.bf16.mxu1 %v4041_v7 }
 0x581   : > { %1874 = vmatpush1.bf16.msra.mxu1 %v4039_v8 }
 0x582   : > { %1875 = vmatprep.subr.bf16.mxu1 %v4044_v28 }
 0x585   : > { %1876 = vmatpush1.bf16.msra.mxu1 %v4042_v9 }
 0x586   : > { %1877 = vmatprep.subr.bf16.mxu1 %v4047_v10 }
 0x589   : > { %1878 = vmatpush1.bf16.msra.mxu1 %v4045_v11 }
 0x58a   : > { %1879 = vmatprep.subr.bf16.mxu1 %v4050_v12 }
 0x58d   : > { %1880 = vmatpush1.bf16.msra.mxu1 %v4048_v13 }
 0x58e   : > { %1881 = vmatprep.subr.bf16.mxu1 %v4053_v14 }
 0x591   : > { %1882 = vmatpush1.bf16.msra.mxu1 %v4051_v15 }
 0x592   : > { %1883 = vmatprep.subr.bf16.mxu1 %v4056_v16  ;;  %v1902_v16 = vld [vmem:[%s5672_s24] sm:$0x3] }
 0x595   : > { %1884 = vmatpush1.bf16.msra.mxu1 %v4054_v17  ;;  %v1903_v17 = vld [vmem:[%s5673_s1] sm:$0x3] }
 0x596   : > { %1885 = vmatprep.subr.bf16.mxu1 %v4059_v18  ;;  %v1940_v18 = vrot.slane %v1902_v16, %v5183_v30 }
 0x599   : > { %1886 = vmatpush1.bf16.msra.mxu1 %v4057_v19  ;;  %v1944_v19 = vrot.slane %v1902_v16, %v5180_v29 }
 0x62f   : > { %v1640_v20 = vpop.f32.mrb[8].mxu1 }
 0x630   : > { %v3697_v21 = vpop.f32.mrb[9].mxu1 }
 0x631   : > { %v1643_v22 = vpop.f32.mrb[10].mxu1 }
 0x632   : > { %v1647_v23 = vpack.c.bf16 %v1643_v22, %v1640_v20  ;;  %v3698_v24 = vpop.f32.mrb[11].mxu1 }
 0x633   : > { %v1530_v25 = vpop.f32.mrb[12].mxu0  ;;  %v1955_v24 = vrot.slane %v1903_v17, %v5183_v30 }
 0x634   : > { %v3685_v26 = vpop.f32.mrb[13].mxu0  ;;  %1887 = vmatprep.mubr.bf16.mxu1 %v1647_v23 }
 0x635   : > { %v1533_v27 = vpop.f32.mrb[14].mxu0 }
 0x636   : > { %v1537_v31 = vpack.c.bf16 %v1533_v27, %v1530_v25  ;;  %v3686_v32 = vpop.f32.mrb[15].mxu0  ;;  %v1959_v25 = vrot.slane %v1903_v17, %v5180_v29 }
 0x638   : > { %1888 = vmatmul.mubr.bf16.vlgmr.msra.gmra.mrb[12].mxu1 %v1537_v31 }
 0x70b   : > { %v1889_v37 = vpop.f32.mrb[12].mxu1 }
 0x70c   : > { %v1890_v38 = vadd.f32 %v1889_v37, %v1688_v34  ;;  %v1891_v40 = vpop.f32.mrb[13].mxu1 }
 0x70d   : > { %v1892_v41 = vadd.f32 %v1891_v40, %v1692_v36  ;;  %v1893_v43 = vpop.f32.mrb[14].mxu1 }
 0x70e   : > { %v1898_v47 = vadd.f32 %v4084_v44, %v1890_v38  ;;  %v1894_v48 = vadd.f32 %v1893_v43, %v1688_v34  ;;  %v1895_v46 = vpop.f32.mrb[15].mxu1 }
 0x70f   : > { %v1899_v50 = vadd.f32 %v4085_v49, %v1892_v41  ;;  %v1896_v53 = vadd.f32 %v1895_v46, %v1692_v36 }
 0x710   : > { %v1982_v45 = vadd.f32 %v1975_v39, %v1898_v47  ;;  %v1900_v55 = vadd.f32 %v4086_v54, %v1894_v48 }
 0x711   : > { %v1983_v56 = vadd.f32 %v1979_v42, %v1899_v50  ;;  %v1901_v52 = vadd.f32 %v4087_v51, %v1896_v53  ;;  %v1904_v57 = vadd.f32 %v1899_v50, %v1898_v47 }
 0x712   : > { %1986 = vst [vmem:[%s5138_s4] sm:$0xff] %v1982_v45  ;;  %v1984_v58 = vadd.f32 %v1975_v39, %v1900_v55 }
 0x713   : > { %1987 = vst [vmem:[%s5138_s4 + $0x8] sm:$0xff] %v1983_v56  ;;  %v1985_v59 = vadd.f32 %v1979_v42, %v1901_v52  ;;  %1905 = vadd.xlane.f32.xlu0 %v1904_v57  ;;  %v1907_v60 = vadd.f32 %v1901_v52, %v1900_v55 }
 0x714   : > { %1988 = vst [vmem:[%s5138_s4 + $0x10] sm:$0xff] %v1984_v58 }
 0x715   : > { %1989 = vst [vmem:[%s5138_s4 + $0x18] sm:$0xff] %v1985_v59  ;;  %1908 = vadd.xlane.f32.xlu1 %v1907_v60 }
 0x7a0   : > { %v1906_v61 = vpop.xlane.xlu0 %1905 }
 0x7a1   : > { %v1910_v62 = vmul.f32 0.00390625, %v1906_v61 }
 0x7a2   : > { %v1909_v63 = vpop.xlane.xlu1 %1908 }
 0x7a3   : > { %v1912_v0 = vsub.f32 %v1898_v47, %v1910_v62  ;;  %v1913_v1 = vsub.f32 %v1899_v50, %v1910_v62  ;;  %v1911_v2 = vmul.f32 0.00390625, %v1909_v63 }
 0x7a5   : > { %v1914_v3 = vsub.f32 %v1900_v55, %v1911_v2  ;;  %v1915_v4 = vsub.f32 %v1901_v52, %v1911_v2  ;;  %v1916_v5 = vmul.f32 %v1912_v0, %v1912_v0  ;;  %v1917_v6 = vmul.f32 %v1913_v1, %v1913_v1 }
 0x7a7   : > { %v1920_v7 = vadd.f32 %v1917_v6, %v1916_v5  ;;  %v1918_v8 = vmul.f32 %v1914_v3, %v1914_v3  ;;  %v1919_v28 = vmul.f32 %v1915_v4, %v1915_v4 }
 0x7a9   : > { %1921 = vadd.xlane.f32.xlu0 %v1920_v7  ;;  %v1923_v9 = vadd.f32 %v1919_v28, %v1918_v8 }
 0x7ab   : > { %1924 = vadd.xlane.f32.xlu1 %v1923_v9 }
 0x836   : > { %v1922_v10 = vpop.xlane.xlu0 %1921 }
 0x837   : > { %v1926_v11 = vmul.f32 0.00390625, %v1922_v10 }
 0x838   : > { %v1925_v12 = vpop.xlane.xlu1 %1924 }
 0x839   : > { %v1928_v13 = vadd.f32 0.02, %v1926_v11  ;;  %v1927_v14 = vmul.f32 0.00390625, %v1925_v12 }
 0x83b   : > { %4080 = vrsqrt.f32 %v1928_v13  ;;  %v1929_v15 = vadd.f32 0.02, %v1927_v14 }
 0x83d   : > { %4082 = vrsqrt.f32 %v1929_v15 }
 0x845   : > { %v4081_v20 = vpop.eup %4080 }
 0x846   : > { %v1932_v21 = vmul.f32 %v4081_v20, %v1912_v0  ;;  %v1933_v22 = vmul.f32 %v4081_v20, %v1913_v1 }
 0x847   : > { %v4083_v23 = vpop.eup %4082 }
 0x848   : > { %v1947_v26 = vmul.f32 %v1940_v18, %v1932_v21  ;;  %v1948_v27 = vmul.f32 %v1944_v19, %v1933_v22  ;;  %v1934_v31 = vmul.f32 %v4083_v23, %v1914_v3  ;;  %v1935_v32 = vmul.f32 %v4083_v23, %v1915_v4 }
 0x84a   : > { %v1949_v33 = vmul.f32 %v1940_v18, %v1934_v31  ;;  %v1950_v34 = vmul.f32 %v1944_v19, %v1935_v32  ;;  %v1962_v35 = vadd.f32 %v1955_v24, %v1947_v26  ;;  %v1963_v36 = vadd.f32 %v1959_v25, %v1948_v27 }
 0x84c   : > { %v1964_v37 = vadd.f32 %v1955_v24, %v1949_v33  ;;  %v1965_v38 = vadd.f32 %v1959_v25, %v1950_v34 }
 0x84e   : > { %v1966_v39 = vpack.c.bf16 %v1964_v37, %v1962_v35  ;;  %v1967_v40 = vpack.c.bf16 %v1965_v38, %v1963_v36 }
 0x850   : > { %1968 = vst [vmem:[#allocation2] sm:$0xff] %v1966_v39  ;;  %1969 = vst [vmem:[#allocation2 + $0x8] sm:$0xff] %v1967_v40 }
 0x851 PF: > { %v4088_v29 = vld [vmem:[%s5130_s2 + $0x4] ss:$16 sps:$4 sm:$0xff]   ;;  %v4090_v30 = vld [vmem:[%s5130_s2] ss:$16 sps:$4 sm:$0xff]   ;;  %v4138_v11 = vld [vmem:[%s5130_s2 + $0xc] ss:$16 sps:$4 sm:$0xff]  }
 0x852   : > { %2406 = vmatprep.subr.bf16.mxu1 %v4088_v29  ;;  %v4091_v41 = vld [vmem:[%s5130_s2 + $0x24] ss:$16 sps:$4 sm:$0xff]   ;;  %v4093_v42 = vld [vmem:[%s5130_s2 + $0x20] ss:$16 sps:$4 sm:$0xff]   ;;  %v4136_v13 = vld [vmem:[%s5130_s2 + $0x8] ss:$16 sps:$4 sm:$0xff]  }
 0x853   : > { %2407 = vmatpush1.bf16.msra.mxu1 %v4090_v30  ;;  %v4094_v43 = vld [vmem:[%s5130_s2 + $0x44] ss:$16 sps:$4 sm:$0xff]   ;;  %v4096_v44 = vld [vmem:[%s5130_s2 + $0x40] ss:$16 sps:$4 sm:$0xff]   ;;  %v4141_v14 = vld [vmem:[%s5130_s2 + $0x2c] ss:$16 sps:$4 sm:$0xff]  }
 0x854   : > { %2408 = vmatprep.subr.bf16.mxu1 %v4091_v41  ;;  %v4097_v47 = vld [vmem:[%s5130_s2 + $0x64] ss:$16 sps:$4 sm:$0xff]   ;;  %v4099_v48 = vld [vmem:[%s5130_s2 + $0x60] ss:$16 sps:$4 sm:$0xff]   ;;  %v4139_v15 = vld [vmem:[%s5130_s2 + $0x28] ss:$16 sps:$4 sm:$0xff]  }
 0x855   : > { %v4100_v46 = vld [vmem:[%s5130_s2 + $0x84] ss:$16 sps:$4 sm:$0xff]   ;;  %v4102_v49 = vld [vmem:[%s5130_s2 + $0x80] ss:$16 sps:$4 sm:$0xff]   ;;  %v4144_v16 = vld [vmem:[%s5130_s2 + $0x4c] ss:$16 sps:$4 sm:$0xff]  }
 0x856   : > { %v4103_v50 = vld [vmem:[%s5130_s2 + $0xa4] ss:$16 sps:$4 sm:$0xff]   ;;  %v4105_v53 = vld [vmem:[%s5130_s2 + $0xa0] ss:$16 sps:$4 sm:$0xff]   ;;  %v4142_v17 = vld [vmem:[%s5130_s2 + $0x48] ss:$16 sps:$4 sm:$0xff]  }
 0x857   : > { %2409 = vmatpush1.bf16.msra.mxu1 %v4093_v42  ;;  %v4106_v45 = vld [vmem:[%s5130_s2 + $0xc4] ss:$16 sps:$4 sm:$0xff]   ;;  %v4108_v55 = vld [vmem:[%s5130_s2 + $0xc0] ss:$16 sps:$4 sm:$0xff]   ;;  %v4147_v18 = vld [vmem:[%s5130_s2 + $0x6c] ss:$16 sps:$4 sm:$0xff]  }
 0x858   : > { %2410 = vmatprep.subr.bf16.mxu1 %v4094_v43  ;;  %v1991_v54 = vld [vmem:[#allocation2 + $0x8] sm:$0xff]  ;;  %v4111_v51 = vld [vmem:[%s5130_s2 + $0xe0] ss:$16 sps:$4 sm:$0xff]   ;;  %v4184_v1 = vld [vmem:[%s5136_s14 + $0x4] ss:$8 sps:$4 sm:$0xff]   ;;  %s5675_s6 = sld [smem:[#allocation40_spill]] }
 0x859   : > { %2438 = vmatprep.mubr.bf16.mxu1 %v1991_v54  ;;  %v4109_v56 = vld [vmem:[%s5130_s2 + $0xe4] ss:$16 sps:$4 sm:$0xff]   ;;  %v4114_v57 = vld [vmem:[%s5130_s2 + $0x100] ss:$16 sps:$4 sm:$0xff]   ;;  %3092 = vmatprep.subr.bf16.mxu0 %v4184_v1  ;;  %v4145_v19 = vld [vmem:[%s5130_s2 + $0x68] ss:$16 sps:$4 sm:$0xff]  }
 0x85a   : > { %v4112_v52 = vld [vmem:[%s5130_s2 + $0x104] ss:$16 sps:$4 sm:$0xff]   ;;  %v4117_v59 = vld [vmem:[%s5130_s2 + $0x120] ss:$16 sps:$4 sm:$0xff]   ;;  %v4150_v20 = vld [vmem:[%s5130_s2 + $0x8c] ss:$16 sps:$4 sm:$0xff]  }
 0x85b   : > { %2411 = vmatpush1.bf16.msra.mxu1 %v4096_v44  ;;  %v4115_v58 = vld [vmem:[%s5130_s2 + $0x124] ss:$16 sps:$4 sm:$0xff]   ;;  %v4120_v61 = vld [vmem:[%s5130_s2 + $0x140] ss:$16 sps:$4 sm:$0xff]   ;;  %v4148_v21 = vld [vmem:[%s5130_s2 + $0x88] ss:$16 sps:$4 sm:$0xff]  }
 0x85c   : > { %2412 = vmatprep.subr.bf16.mxu1 %v4097_v47  ;;  %v4118_v60 = vld [vmem:[%s5130_s2 + $0x144] ss:$16 sps:$4 sm:$0xff]   ;;  %v4123_v63 = vld [vmem:[%s5130_s2 + $0x160] ss:$16 sps:$4 sm:$0xff]   ;;  %v4153_v22 = vld [vmem:[%s5130_s2 + $0xac] ss:$16 sps:$4 sm:$0xff]  }
 0x85d   : > { %v4121_v62 = vld [vmem:[%s5130_s2 + $0x164] ss:$16 sps:$4 sm:$0xff]   ;;  %v4186_v2 = vld [vmem:[%s5136_s14] ss:$8 sps:$4 sm:$0xff]   ;;  %v4189_v6 = vld [vmem:[%s5136_s14 + $0x10] ss:$8 sps:$4 sm:$0xff]  }
 0x85e   : > { %v4124_v0 = vld [vmem:[%s5130_s2 + $0x184] ss:$16 sps:$4 sm:$0xff]   ;;  %v4126_v3 = vld [vmem:[%s5130_s2 + $0x180] ss:$16 sps:$4 sm:$0xff]   ;;  %3093 = vmatpush1.bf16.msra.mxu0 %v4186_v2  ;;  %v4151_v23 = vld [vmem:[%s5130_s2 + $0xa8] ss:$16 sps:$4 sm:$0xff]  }
 0x85f   : > { %2413 = vmatpush1.bf16.msra.mxu1 %v4099_v48  ;;  %v4187_v4 = vld [vmem:[%s5136_s14 + $0x14] ss:$8 sps:$4 sm:$0xff]   ;;  %v4129_v7 = vld [vmem:[%s5130_s2 + $0x1a0] ss:$16 sps:$4 sm:$0xff]   ;;  %v4154_v25 = vld [vmem:[%s5130_s2 + $0xc8] ss:$16 sps:$4 sm:$0xff]  }
 0x860   : > { %2414 = vmatprep.subr.bf16.mxu1 %v4100_v46  ;;  %v4127_v5 = vld [vmem:[%s5130_s2 + $0x1a4] ss:$16 sps:$4 sm:$0xff]   ;;  %3094 = vmatprep.subr.bf16.mxu0 %v4187_v4  ;;  %v4132_v28 = vld [vmem:[%s5130_s2 + $0x1c0] ss:$16 sps:$4 sm:$0xff]   ;;  %v4156_v24 = vld [vmem:[%s5130_s2 + $0xcc] ss:$16 sps:$4 sm:$0xff]  }
 0x861   : > { %v4130_v8 = vld [vmem:[%s5130_s2 + $0x1c4] ss:$16 sps:$4 sm:$0xff]   ;;  %v4135_v10 = vld [vmem:[%s5130_s2 + $0x1e0] ss:$16 sps:$4 sm:$0xff]   ;;  %v4159_v26 = vld [vmem:[%s5130_s2 + $0xec] ss:$16 sps:$4 sm:$0xff]  }
 0x862   : > { %3095 = vmatpush1.bf16.msra.mxu0 %v4189_v6  ;;  %v4133_v9 = vld [vmem:[%s5130_s2 + $0x1e4] ss:$16 sps:$4 sm:$0xff]   ;;  %v5286_v12 = vld [vmem:[#allocation2] sm:$0xff]  ;;  %v4157_v27 = vld [vmem:[%s5130_s2 + $0xe8] ss:$16 sps:$4 sm:$0xff]   ;;  %s5676_s26 = sld [smem:[#allocation25_spill]] }
 0x863   : > { %2415 = vmatpush1.bf16.msra.mxu1 %v4102_v49  ;;  %v4162_v31 = vld [vmem:[%s5130_s2 + $0x10c] ss:$16 sps:$4 sm:$0xff]   ;;  %v4160_v32 = vld [vmem:[%s5130_s2 + $0x108] ss:$16 sps:$4 sm:$0xff]   ;;  %s5677_s9 = sld [smem:[#allocation42_spill]]  ;;  %s3187_s1 = scalar_lea.sflag [#allocation6], %s5110_s21 }
 0x864   : > { %2416 = vmatprep.subr.bf16.mxu1 %v4103_v50  ;;  %v4165_v33 = vld [vmem:[%s5130_s2 + $0x12c] ss:$16 sps:$4 sm:$0xff]   ;;  %v4163_v34 = vld [vmem:[%s5130_s2 + $0x128] ss:$16 sps:$4 sm:$0xff]   ;;  %p5678_p3 = scmp.ne.s32.totalorder %s5645_s23, 0 }
 0x865   : > { %v4168_v35 = vld [vmem:[%s5130_s2 + $0x14c] ss:$16 sps:$4 sm:$0xff]   ;;  %v4166_v36 = vld [vmem:[%s5130_s2 + $0x148] ss:$16 sps:$4 sm:$0xff]  }
 0x866   : > { %v4171_v37 = vld [vmem:[%s5130_s2 + $0x16c] ss:$16 sps:$4 sm:$0xff]   ;;  %v4169_v38 = vld [vmem:[%s5130_s2 + $0x168] ss:$16 sps:$4 sm:$0xff]  }
 0x867   : > { %2417 = vmatpush1.bf16.msra.mxu1 %v4105_v53  ;;  %v4174_v39 = vld [vmem:[%s5130_s2 + $0x18c] ss:$16 sps:$4 sm:$0xff]   ;;  %v4172_v40 = vld [vmem:[%s5130_s2 + $0x188] ss:$16 sps:$4 sm:$0xff]  }
 0x868   : > { %2418 = vmatprep.subr.bf16.mxu1 %v4106_v45  ;;  %v4177_v29 = vld [vmem:[%s5130_s2 + $0x1ac] ss:$16 sps:$4 sm:$0xff]   ;;  %v4175_v30 = vld [vmem:[%s5130_s2 + $0x1a8] ss:$16 sps:$4 sm:$0xff]   ;;  %s3666_s20 = sshll.u32 %s5676_s26, 9 }
 0x869   : > { %v4180_v41 = vld [vmem:[%s5130_s2 + $0x1cc] ss:$16 sps:$4 sm:$0xff]   ;;  %v4178_v42 = vld [vmem:[%s5130_s2 + $0x1c8] ss:$16 sps:$4 sm:$0xff]   ;;  %s5501_s15 = scalar_lea.hbm %s5677_s9, %s3666_s20 }
 0x86a   : > { %v4183_v43 = vld [vmem:[%s5130_s2 + $0x1ec] ss:$16 sps:$4 sm:$0xff]   ;;  %v4181_v44 = vld [vmem:[%s5130_s2 + $0x1e8] ss:$16 sps:$4 sm:$0xff]   ;;  %s5674_s2 = sld [smem:[#allocation24_spill]] }
 0x86b   : > { %2419 = vmatpush1.bf16.msra.mxu1 %v4108_v55  ;;  %v4190_v47 = vld [vmem:[%s5136_s14 + $0x24] ss:$8 sps:$4 sm:$0xff]   ;;  %v4192_v48 = vld [vmem:[%s5136_s14 + $0x20] ss:$8 sps:$4 sm:$0xff]   ;;  %v4193_v46 = vld [vmem:[%s5136_s14 + $0x34] ss:$8 sps:$4 sm:$0xff]  }
 0x86c   : > { %2420 = vmatprep.subr.bf16.mxu1 %v4109_v56  ;;  %3096 = vmatprep.subr.bf16.mxu0 %v4190_v47  ;;  %v4195_v49 = vld [vmem:[%s5136_s14 + $0x30] ss:$8 sps:$4 sm:$0xff]   ;;  %v4196_v50 = vld [vmem:[%s5136_s14 + $0x44] ss:$8 sps:$4 sm:$0xff]   ;;  %v4198_v53 = vld [vmem:[%s5136_s14 + $0x40] ss:$8 sps:$4 sm:$0xff]  }
 0x86d   : > { %3097 = vmatpush1.bf16.msra.mxu0 %v4192_v48  ;;  %v4199_v45 = vld [vmem:[%s5136_s14 + $0x54] ss:$8 sps:$4 sm:$0xff]   ;;  %v4202_v55 = vld [vmem:[%s5136_s14 + $0x64] ss:$8 sps:$4 sm:$0xff]   ;;  %v4204_v56 = vld [vmem:[%s5136_s14 + $0x60] ss:$8 sps:$4 sm:$0xff]  }
 0x86e   : > { %3098 = vmatprep.subr.bf16.mxu0 %v4193_v46  ;;  %v4220_v1 = vld [vmem:[%s5136_s14 + $0xc4] ss:$8 sps:$4 sm:$0xff]   ;;  %v4222_v2 = vld [vmem:[%s5136_s14 + $0xc0] ss:$8 sps:$4 sm:$0xff]   ;;  %v4225_v4 = vld [vmem:[%s5136_s14 + $0xd0] ss:$8 sps:$4 sm:$0xff]  }
 0x86f   : > { %2421 = vmatpush1.bf16.msra.mxu1 %v4111_v51  ;;  %v4205_v51 = vld [vmem:[%s5136_s14 + $0x74] ss:$8 sps:$4 sm:$0xff]   ;;  %v4228_v6 = vld [vmem:[%s5136_s14 + $0xe0] ss:$8 sps:$4 sm:$0xff]  }
 0x870   : > { %2422 = vmatprep.subr.bf16.mxu1 %v4112_v52  ;;  %v4207_v52 = vld [vmem:[%s5136_s14 + $0x70] ss:$8 sps:$4 sm:$0xff]   ;;  %s2056_s19 = sshra.s32 %s5674_s2, 1  ;;  %s2059_s22 = sand.u32 1, %s5674_s2 }
 0x871   : > { %3099 = vmatpush1.bf16.msra.mxu0 %v4195_v49  ;;  %s3665_s5 = sshll.u32 %s2056_s19, 3  ;;  %s4667_s19 = smov [#allocation16]  }
 0x872   : > { %3100 = vmatprep.subr.bf16.mxu0 %v4196_v50  ;;  %s2062_s7 = sadd.s32 %s3665_s5, %s2059_s22  ;;  %s4518_s22 = sshll.u32 %s4667_s19, 4  ;;  %s4519_s22 = int_to_ptr.vmem [resolvable:$false] %s4518_s22 }
 0x873   : > { %2423 = vmatpush1.bf16.msra.mxu1 %v4114_v57  ;;  %v4208_v57 = vld [vmem:[%s5136_s14 + $0x84] ss:$8 sps:$4 sm:$0xff]   ;;  %s2063_s13 = scalar_lea.vmem %s5675_s6, %s2062_s7  ;;  %s4520_s5 = scalar_lea.vmem %s4519_s22, 1024 }
 0x874   : > { %2424 = vmatprep.subr.bf16.mxu1 %v4115_v58  ;;  %v4210_v58 = vld [vmem:[%s5136_s14 + $0x80] ss:$8 sps:$4 sm:$0xff]  }
 0x875   : > { %3101 = vmatpush1.bf16.msra.mxu0 %v4198_v53 }
 0x876   : > { %3102 = vmatprep.subr.bf16.mxu0 %v4199_v45 }
 0x877   : > { %2425 = vmatpush1.bf16.msra.mxu1 %v4117_v59  ;;  %v4211_v59 = vld [vmem:[%s5136_s14 + $0x94] ss:$8 sps:$4 sm:$0xff]  }
 0x878   : > { %2426 = vmatprep.subr.bf16.mxu1 %v4118_v60  ;;  %v4213_v60 = vld [vmem:[%s5136_s14 + $0x90] ss:$8 sps:$4 sm:$0xff]  }
 0x87b   : > { %2427 = vmatpush1.bf16.msra.mxu1 %v4120_v61  ;;  %v4214_v61 = vld [vmem:[%s5136_s14 + $0xa4] ss:$8 sps:$4 sm:$0xff]  }
 0x87c   : > { %2428 = vmatprep.subr.bf16.mxu1 %v4121_v62  ;;  %v4216_v62 = vld [vmem:[%s5136_s14 + $0xa0] ss:$8 sps:$4 sm:$0xff]  }
 0x87f   : > { %2429 = vmatpush1.bf16.msra.mxu1 %v4123_v63  ;;  %v4217_v63 = vld [vmem:[%s5136_s14 + $0xb4] ss:$8 sps:$4 sm:$0xff]  }
 0x880   : > { %2430 = vmatprep.subr.bf16.mxu1 %v4124_v0  ;;  %v4219_v0 = vld [vmem:[%s5136_s14 + $0xb0] ss:$8 sps:$4 sm:$0xff]  }
 0x883   : > { %2431 = vmatpush1.bf16.msra.mxu1 %v4126_v3  ;;  %v4223_v3 = vld [vmem:[%s5136_s14 + $0xd4] ss:$8 sps:$4 sm:$0xff]  }
 0x884   : > { %2432 = vmatprep.subr.bf16.mxu1 %v4127_v5  ;;  %v4226_v5 = vld [vmem:[%s5136_s14 + $0xe4] ss:$8 sps:$4 sm:$0xff]  }
 0x887   : > { %2433 = vmatpush1.bf16.msra.mxu1 %v4129_v7  ;;  %v4229_v7 = vld [vmem:[%s5136_s14 + $0xf4] ss:$8 sps:$4 sm:$0xff]  }
 0x888   : > { %2434 = vmatprep.subr.bf16.mxu1 %v4130_v8  ;;  %v4231_v8 = vld [vmem:[%s5136_s14 + $0xf0] ss:$8 sps:$4 sm:$0xff]  }
 0x88b   : > { %2435 = vmatpush1.bf16.msra.mxu1 %v4132_v28  ;;  %v4234_v28 = vld [vmem:[%s5136_s14 + $0x104] ss:$8 sps:$4 sm:$0xff]  }
 0x88c   : > { %2436 = vmatprep.subr.bf16.mxu1 %v4133_v9  ;;  %v2066_v9 = vlaneseq }
 0x88f   : > { %2437 = vmatpush1.bf16.msra.mxu1 %v4135_v10  ;;  %v5352_v10 = vshrl.u32 %v2066_v9, 7 }
 0x890   : > { %2449 = vmatprep.subr.bf16.mxu1 %v4138_v11 }
 0x891   : > { %v2068_v11 = vsub.s32 0, %v5352_v10 }
 0x892   : > { %2439 = vmatmul.mubr.bf16.vlgmr.msra.gmra.mrb[0].mxu1 %v5286_v12 }
 0x893   : > { %2450 = vmatpush1.bf16.msra.mxu1 %v4136_v13  ;;  %2481 = vmatprep.mubr.bf16.mxu1 %v1991_v54  ;;  %v4201_v54 = vld [vmem:[%s5136_s14 + $0x50] ss:$8 sps:$4 sm:$0xff]   ;;  %v2072_v13 = vsub.s32 1, %v5352_v10 }
 0x894   : > { %2451 = vmatprep.subr.bf16.mxu1 %v4141_v14  ;;  %3103 = vmatpush1.bf16.msra.mxu0 %v4201_v54 }
 0x895   : > { %3104 = vmatprep.subr.bf16.mxu0 %v4202_v55 }
 0x897   : > { %2452 = vmatpush1.bf16.msra.mxu1 %v4139_v15 }
 0x898   : > { %2453 = vmatprep.subr.bf16.mxu1 %v4144_v16  ;;  %3105 = vmatpush1.bf16.msra.mxu0 %v4204_v56 }
 0x899   : > { %3106 = vmatprep.subr.bf16.mxu0 %v4205_v51 }
 0x89b   : > { %2454 = vmatpush1.bf16.msra.mxu1 %v4142_v17 }
 0x89c   : > { %2455 = vmatprep.subr.bf16.mxu1 %v4147_v18  ;;  %3107 = vmatpush1.bf16.msra.mxu0 %v4207_v52 }
 0x89d   : > { %3108 = vmatprep.subr.bf16.mxu0 %v4208_v57 }
 0x89f   : > { %2456 = vmatpush1.bf16.msra.mxu1 %v4145_v19 }
 0x8a0   : > { %2457 = vmatprep.subr.bf16.mxu1 %v4150_v20  ;;  %3109 = vmatpush1.bf16.msra.mxu0 %v4210_v58 }
 0x8a1   : > { %3110 = vmatprep.subr.bf16.mxu0 %v4211_v59 }
 0x8a3   : > { %2458 = vmatpush1.bf16.msra.mxu1 %v4148_v21 }
 0x8a4   : > { %2459 = vmatprep.subr.bf16.mxu1 %v4153_v22  ;;  %3111 = vmatpush1.bf16.msra.mxu0 %v4213_v60 }
 0x8a5   : > { %3112 = vmatprep.subr.bf16.mxu0 %v4214_v61 }
 0x8a7   : > { %2460 = vmatpush1.bf16.msra.mxu1 %v4151_v23 }
 0x8a8   : > { %2461 = vmatprep.subr.bf16.mxu1 %v4156_v24  ;;  %3113 = vmatpush1.bf16.msra.mxu0 %v4216_v62 }
 0x8a9   : > { %3114 = vmatprep.subr.bf16.mxu0 %v4217_v63 }
 0x8ab   : > { %2462 = vmatpush1.bf16.msra.mxu1 %v4154_v25 }
 0x8ac   : > { %2463 = vmatprep.subr.bf16.mxu1 %v4159_v26  ;;  %3115 = vmatpush1.bf16.msra.mxu0 %v4219_v0 }
 0x8ad   : > { %3116 = vmatprep.subr.bf16.mxu0 %v4220_v1 }
 0x8af   : > { %2464 = vmatpush1.bf16.msra.mxu1 %v4157_v27 }
 0x8b0   : > { %2465 = vmatprep.subr.bf16.mxu1 %v4162_v31  ;;  %3117 = vmatpush1.bf16.msra.mxu0 %v4222_v2 }
 0x8b1   : > { %3118 = vmatprep.subr.bf16.mxu0 %v4223_v3 }
 0x8b3   : > { %2466 = vmatpush1.bf16.msra.mxu1 %v4160_v32 }
 0x8b4   : > { %2467 = vmatprep.subr.bf16.mxu1 %v4165_v33  ;;  %3119 = vmatpush1.bf16.msra.mxu0 %v4225_v4 }
 0x8b5   : > { %3120 = vmatprep.subr.bf16.mxu0 %v4226_v5 }
 0x8b7   : > { %2468 = vmatpush1.bf16.msra.mxu1 %v4163_v34 }
 0x8b8   : > { %2469 = vmatprep.subr.bf16.mxu1 %v4168_v35  ;;  %3121 = vmatpush1.bf16.msra.mxu0 %v4228_v6 }
 0x8b9   : > { %3122 = vmatprep.subr.bf16.mxu0 %v4229_v7 }
 0x8bb   : > { %2470 = vmatpush1.bf16.msra.mxu1 %v4166_v36 }
 0x8bc   : > { %2471 = vmatprep.subr.bf16.mxu1 %v4171_v37  ;;  %3123 = vmatpush1.bf16.msra.mxu0 %v4231_v8 }
 0x8bd   : > { %3135 = vmatprep.subr.bf16.mxu0 %v4234_v28 }
 0x8bf   : > { %2472 = vmatpush1.bf16.msra.mxu1 %v4169_v38 }
 0x8c0   : > { %2473 = vmatprep.subr.bf16.mxu1 %v4174_v39 }
 0x8c3   : > { %2474 = vmatpush1.bf16.msra.mxu1 %v4172_v40 }
 0x8c4   : > { %2475 = vmatprep.subr.bf16.mxu1 %v4177_v29 }
 0x8c7   : > { %2476 = vmatpush1.bf16.msra.mxu1 %v4175_v30 }
 0x8c8   : > { %2477 = vmatprep.subr.bf16.mxu1 %v4180_v41 }
 0x8cb   : > { %2478 = vmatpush1.bf16.msra.mxu1 %v4178_v42 }
 0x8cc   : > { %2479 = vmatprep.subr.bf16.mxu1 %v4183_v43 }
 0x8cf   : > { %2480 = vmatpush1.bf16.msra.mxu1 %v4181_v44 }
 0x8d2   : > { %2482 = vmatmul.mubr.bf16.vlgmr.msra.gmra.mrb[4].mxu1 %v5286_v12  ;;  %v5358_v12 = vld [vmem:[%s2063_s13] ss:$2 sm:$0xf] }
 0x8d3   : > { %v2069_v14 = vrot.slane %v5358_v12, %v2068_v11  ;;  %v2073_v15 = vrot.slane %v5358_v12, %v2072_v13 }
 0x965   : > { %v2440_v16 = vpop.f32.mrb[0].mxu1 }
 0x966   : > { %v5363_v17 = vadd.f32 %v2440_v16, %v2069_v14  ;;  %v2442_v18 = vpop.f32.mrb[1].mxu1 }
 0x967   : > { %v5365_v19 = vadd.f32 %v2442_v18, %v2073_v15  ;;  %v2444_v20 = vpop.f32.mrb[2].mxu1 }
 0x968   : > { %v5368_v21 = vmul.f32 0.70710677, %v5363_v17  ;;  %v5370_v22 = vadd.f32 %v2444_v20, %v2069_v14  ;;  %v2446_v23 = vpop.f32.mrb[3].mxu1 }
 0x969   : > { %v5373_v24 = vmul.f32 0.70710677, %v5365_v19  ;;  %v5375_v25 = vadd.f32 %v2446_v23, %v2073_v15 }
 0x96a   : > { %v2524_v26 = vand.u32 2147483647, %v5368_v21  ;;  %v5379_v27 = vmul.f32 0.70710677, %v5370_v22  ;;  %vm2508_vm2 = vcmp.ge.f32.partialorder %v5368_v21, 0.0 }
 0x96b   : > { %v2525_v31 = vand.u32 2147483647, %v5373_v24  ;;  %v5384_v35 = vmul.f32 0.70710677, %v5375_v25  ;;  %vm2509_vm3 = vcmp.ge.f32.partialorder %v5373_v24, 0.0 }
 0x96c   : > { %v2532_v32 = vmul.f32 0.3275911, %v2524_v26  ;;  %v2528_v33 = vand.u32 2147483647, %v5379_v27  ;;  %v2628_v41 = vsub.f32 0.0, %v2524_v26  ;;  %vm2512_vm4 = vcmp.ge.f32.partialorder %v5379_v27, 0.0 }
 0x96d   : > { %v2533_v34 = vmul.f32 0.3275911, %v2525_v31  ;;  %v2529_v39 = vand.u32 2147483647, %v5384_v35  ;;  %v2629_v42 = vsub.f32 0.0, %v2525_v31  ;;  %vm2513_vm5 = vcmp.ge.f32.partialorder %v5384_v35, 0.0 }
 0x96e   : > { %v2540_v36 = vadd.f32 1.0, %v2532_v32  ;;  %v2536_v37 = vmul.f32 0.3275911, %v2528_v33  ;;  %v2636_v44 = vmul.f32 %v2628_v41, %v2524_v26  ;;  %v2632_v47 = vsub.f32 0.0, %v2528_v33 }
 0x96f   : > { %v2541_v38 = vadd.f32 1.0, %v2533_v34  ;;  %v2537_v29 = vmul.f32 0.3275911, %v2529_v39  ;;  %v2637_v49 = vmul.f32 %v2629_v42, %v2525_v31  ;;  %v2633_v50 = vsub.f32 0.0, %v2529_v39 }
 0x970   : > { %4280 = vrcp.f32 %v2540_v36  ;;  %v2544_v40 = vadd.f32 1.0, %v2536_v37  ;;  %v2644_v55 = vmul.f32 1.442695, %v2636_v44  ;;  %v2640_v56 = vmul.f32 %v2632_v47, %v2528_v33 }
 0x971   : > { %4282 = vrcp.f32 %v2541_v38  ;;  %v2545_v30 = vadd.f32 1.0, %v2537_v29  ;;  %v2646_v57 = vmul.f32 1.442695, %v2637_v49  ;;  %v2641_v60 = vmul.f32 %v2633_v50, %v2529_v39 }
 0x972   : > { %4284 = vrcp.f32 %v2544_v40  ;;  %v2652_v1 = vmul.f32 1.442695, %v2640_v56  ;;  %v4666_v47 = vmov -1.0   ;;  %v2493_v35 = vmul.f32 0.5, %v5365_v19 }
 0x973   : > { %4286 = vrcp.f32 %v2545_v30  ;;  %v2654_v6 = vmul.f32 1.442695, %v2641_v60  ;;  %v2521_v27 = vsel %vm2513_vm5, 1.0, %v4666_v47  ;;  %v2080_v19 = vsub.s32 3, %v5352_v10 }
 0x974   : > { %4288 = vpow2.f32 %v2644_v55 }
 0x975   : > { %4290 = vpow2.f32 %v2646_v57  ;;  %v2492_v57 = vmul.f32 0.5, %v5363_v17 }
 0x976   : > { %4292 = vpow2.f32 %v2652_v1 }
 0x977   : > { %4294 = vpow2.f32 %v2654_v6  ;;  %v4237_v6 = vld [vmem:[%s5136_s14 + $0x114] ss:$8 sps:$4 sm:$0xff]  }
 0x97a   : > { %v4281_v43 = vpop.eup %4280 }
 0x97b   : > { %v4283_v48 = vpop.eup %4282  ;;  %v2556_v46 = vmul.f32 1.0614054, %v4281_v43 }
 0x97c   : > { %v2557_v53 = vmul.f32 1.0614054, %v4283_v48  ;;  %v4285_v54 = vpop.eup %4284 }
 0x97d   : > { %v2564_v45 = vadd.f32 -1.4531521, %v2556_v46  ;;  %v2560_v58 = vmul.f32 1.0614054, %v4285_v54  ;;  %v4287_v59 = vpop.eup %4286 }
 0x97e   : > { %v2565_v51 = vadd.f32 -1.4531521, %v2557_v53  ;;  %v2561_v0 = vmul.f32 1.0614054, %v4287_v59  ;;  %v4289_v34 = vpop.eup %4288  ;;  %v2517_v53 = vsel %vm2509_vm3, 1.0, %v4666_v47 }
 0x97f   : > { %v2572_v52 = vmul.f32 %v4281_v43, %v2564_v45  ;;  %v2568_v63 = vadd.f32 -1.4531521, %v2560_v58  ;;  %v4291_v37 = vpop.eup %4290  ;;  %v2496_v58 = vmul.f32 0.5, %v5370_v22  ;;  %v2076_v22 = vsub.s32 2, %v5352_v10 }
 0x980   : > { %v2573_v61 = vmul.f32 %v4283_v48, %v2565_v51  ;;  %v2569_v5 = vadd.f32 -1.4531521, %v2561_v0  ;;  %v4293_v44 = vpop.eup %4292  ;;  %v2497_v0 = vmul.f32 0.5, %v5375_v25 }
 0x981   : > { %v2580_v62 = vadd.f32 1.4214138, %v2572_v52  ;;  %v2576_v4 = vmul.f32 %v4285_v54, %v2568_v63  ;;  %v4295_v21 = vpop.eup %4294  ;;  %v2077_v25 = vrot.slane %v5358_v12, %v2076_v22 }
 0x982   : > { %v2581_v2 = vadd.f32 1.4214138, %v2573_v61  ;;  %v2577_v9 = vmul.f32 %v4287_v59, %v2569_v5  ;;  %v4232_v5 = vld [vmem:[%s5136_s14 + $0x100] ss:$8 sps:$4 sm:$0xff]  }
 0x983   : > { %v2588_v3 = vmul.f32 %v4281_v43, %v2580_v62  ;;  %v2584_v28 = vadd.f32 1.4214138, %v2576_v4 }
 0x984   : > { %v2589_v7 = vmul.f32 %v4283_v48, %v2581_v2  ;;  %v2585_v15 = vadd.f32 1.4214138, %v2577_v9 }
 0x985   : > { %v2596_v8 = vadd.f32 -0.28449672, %v2588_v3  ;;  %v2592_v14 = vmul.f32 %v4285_v54, %v2584_v28  ;;  %v2081_v28 = vrot.slane %v5358_v12, %v2080_v19 }
 0x986   : > { %v2597_v11 = vadd.f32 -0.28449672, %v2589_v7  ;;  %v2593_v23 = vmul.f32 %v4287_v59, %v2585_v15  ;;  %v4235_v7 = vld [vmem:[%s5136_s14 + $0x110] ss:$8 sps:$4 sm:$0xff]   ;;  %v4243_v15 = vld [vmem:[%s5136_s14 + $0x134] ss:$8 sps:$4 sm:$0xff]  }
 0x987   : > { %v2604_v13 = vmul.f32 %v4281_v43, %v2596_v8  ;;  %v2600_v20 = vadd.f32 -0.28449672, %v2592_v14  ;;  %v4240_v8 = vld [vmem:[%s5136_s14 + $0x124] ss:$8 sps:$4 sm:$0xff]  }
 0x988   : > { %v2605_v16 = vmul.f32 %v4283_v48, %v2597_v11  ;;  %v2601_v33 = vadd.f32 -0.28449672, %v2593_v23  ;;  %v4238_v11 = vld [vmem:[%s5136_s14 + $0x120] ss:$8 sps:$4 sm:$0xff]  }
 0x989   : > { %v2612_v18 = vadd.f32 0.2548296, %v2604_v13  ;;  %v2608_v32 = vmul.f32 %v4285_v54, %v2600_v20 }
 0x98a   : > { %v2613_v26 = vadd.f32 0.2548296, %v2605_v16  ;;  %v2609_v40 = vmul.f32 %v4287_v59, %v2601_v33 }
 0x98b   : > { %v2620_v31 = vmul.f32 %v4281_v43, %v2612_v18  ;;  %v2616_v39 = vadd.f32 0.2548296, %v2608_v32  ;;  %v2516_v43 = vsel %vm2508_vm2, 1.0, %v4666_v47 }
 0x98c   : > { %v2621_v36 = vmul.f32 %v4283_v48, %v2613_v26  ;;  %v2617_v42 = vadd.f32 0.2548296, %v2609_v40  ;;  %v4241_v26 = vld [vmem:[%s5136_s14 + $0x130] ss:$8 sps:$4 sm:$0xff]   ;;  %v4244_v40 = vld [vmem:[%s5136_s14 + $0x140] ss:$8 sps:$4 sm:$0xff]  }
 0x98d   : > { %v2660_v38 = vmul.f32 %v4289_v34, %v2620_v31  ;;  %v2624_v41 = vmul.f32 %v4285_v54, %v2616_v39  ;;  %v2520_v54 = vsel %vm2512_vm4, 1.0, %v4666_v47  ;;  %v4246_v34 = vld [vmem:[%s5136_s14 + $0x144] ss:$8 sps:$4 sm:$0xff]  }
 0x98e   : > { %v2661_v29 = vmul.f32 %v4291_v37, %v2621_v36  ;;  %v2625_v50 = vmul.f32 %v4287_v59, %v2617_v42 }
 0x98f   : > { %v2668_v30 = vsub.f32 1.0, %v2660_v38  ;;  %v2664_v48 = vmul.f32 %v4293_v44, %v2624_v41  ;;  %v4249_v41 = vld [vmem:[%s5136_s14 + $0x154] ss:$8 sps:$4 sm:$0xff]  }
 0x990   : > { %v2669_v46 = vsub.f32 1.0, %v2661_v29  ;;  %v2665_v55 = vmul.f32 %v4295_v21, %v2625_v50  ;;  %v4252_v50 = vld [vmem:[%s5136_s14 + $0x164] ss:$8 sps:$4 sm:$0xff]  }
 0x991   : > { %v2676_v49 = vmul.f32 %v2668_v30, %v2516_v43  ;;  %v2672_v45 = vsub.f32 1.0, %v2664_v48 }
 0x992   : > { %v2677_v24 = vmul.f32 %v2669_v46, %v2517_v53  ;;  %v2673_v52 = vsub.f32 1.0, %v2665_v55  ;;  %v4250_v53 = vld [vmem:[%s5136_s14 + $0x160] ss:$8 sps:$4 sm:$0xff]   ;;  %v4255_v55 = vld [vmem:[%s5136_s14 + $0x174] ss:$8 sps:$4 sm:$0xff]  }
 0x993   : > { %v2684_v56 = vadd.f32 1.0, %v2676_v49  ;;  %v2680_v51 = vmul.f32 %v2672_v45, %v2520_v54  ;;  %v4247_v49 = vld [vmem:[%s5136_s14 + $0x150] ss:$8 sps:$4 sm:$0xff]  }
 0x994   : > { %v2681_v60 = vmul.f32 %v2673_v52, %v2521_v27  ;;  %v2685_v61 = vadd.f32 1.0, %v2677_v24  ;;  %v4253_v54 = vld [vmem:[%s5136_s14 + $0x170] ss:$8 sps:$4 sm:$0xff]  }
 0x995   : > { %v2688_v59 = vadd.f32 1.0, %v2680_v51  ;;  %v2692_v62 = vmul.f32 %v2684_v56, %v2492_v57  ;;  %v4258_v57 = vld [vmem:[%s5136_s14 + $0x184] ss:$8 sps:$4 sm:$0xff]  }
 0x996   : > { %v2689_v1 = vadd.f32 1.0, %v2681_v60  ;;  %v2693_v2 = vmul.f32 %v2685_v61, %v2493_v35 }
 0x997   : > { %v2696_v63 = vmul.f32 %v2688_v59, %v2496_v58 }
 0x998   : > { %v2697_v3 = vmul.f32 %v2689_v1, %v2497_v0 }
 0x999   : > { %v2704_v17 = vpack.c.bf16 %v2696_v63, %v2692_v62  ;;  %v4256_v62 = vld [vmem:[%s5136_s14 + $0x180] ss:$8 sps:$4 sm:$0xff]  }
 0x99a   : > { %v2705_v4 = vpack.c.bf16 %v2697_v3, %v2693_v2  ;;  %v4261_v3 = vld [vmem:[%s5136_s14 + $0x194] ss:$8 sps:$4 sm:$0xff]  }
 0x99c   : > { %3124 = vmatprep.mubr.bf16.mxu0 %v2705_v4 }
 0x99d   : > { %3125 = vmatmul.mubr.bf16.vlgmr.msra.gmra.mrb[0].mxu0 %v2704_v17 }
 0x99e   : > { %3136 = vmatpush1.bf16.msra.mxu0 %v4232_v5 }
 0x99f   : > { %3137 = vmatprep.subr.bf16.mxu0 %v4237_v6 }
 0x9a2   : > { %3138 = vmatpush1.bf16.msra.mxu0 %v4235_v7  ;;  %v4259_v7 = vld [vmem:[%s5136_s14 + $0x190] ss:$8 sps:$4 sm:$0xff]  }
 0x9a3   : > { %3139 = vmatprep.subr.bf16.mxu0 %v4240_v8 }
 0x9a5   : > { %v2483_v9 = vpop.f32.mrb[4].mxu1 }
 0x9a6   : > { %v5408_v13 = vadd.f32 %v2483_v9, %v2077_v25  ;;  %v2485_v14 = vpop.f32.mrb[5].mxu1  ;;  %3140 = vmatpush1.bf16.msra.mxu0 %v4238_v11 }
 0x9a7   : > { %v5411_v10 = vadd.f32 %v2485_v14, %v2081_v28  ;;  %v2487_v16 = vpop.f32.mrb[6].mxu1  ;;  %3141 = vmatprep.subr.bf16.mxu0 %v4243_v15  ;;  %v4264_v14 = vld [vmem:[%s5136_s14 + $0x1a4] ss:$8 sps:$4 sm:$0xff]  }
 0x9a8   : > { %v5414_v18 = vmul.f32 0.70710677, %v5408_v13  ;;  %v5416_v20 = vadd.f32 %v2487_v16, %v2077_v25  ;;  %v2489_v23 = vpop.f32.mrb[7].mxu1 }
 0x9a9   : > { %v5419_v12 = vmul.f32 0.70710677, %v5411_v10  ;;  %v5426_v33 = vadd.f32 %v2489_v23, %v2081_v28 }
 0x9aa   : > { %v2526_v31 = vand.u32 2147483647, %v5414_v18  ;;  %v5424_v32 = vmul.f32 0.70710677, %v5416_v20  ;;  %3142 = vmatpush1.bf16.msra.mxu0 %v4241_v26  ;;  %vm2510_vm6 = vcmp.ge.f32.partialorder %v5414_v18, 0.0 }
 0x9ab   : > { %v2527_v36 = vand.u32 2147483647, %v5419_v12  ;;  %v5433_v30 = vmul.f32 0.70710677, %v5426_v33  ;;  %3143 = vmatprep.subr.bf16.mxu0 %v4246_v34  ;;  %vm2511_vm7 = vcmp.ge.f32.partialorder %v5419_v12, 0.0  ;;  %v2518_v18 = vsel %vm2510_vm6, 1.0, %v4666_v47 }
 0x9ac   : > { %v2534_v37 = vmul.f32 0.3275911, %v2526_v31  ;;  %v2530_v39 = vand.u32 2147483647, %v5424_v32  ;;  %v2630_v45 = vsub.f32 0.0, %v2526_v31  ;;  %vm2514_vm8 = vcmp.ge.f32.partialorder %v5424_v32, 0.0 }
 0x9ad   : > { %v2535_v38 = vmul.f32 0.3275911, %v2527_v36  ;;  %v2531_v43 = vand.u32 2147483647, %v5433_v30  ;;  %v2631_v24 = vsub.f32 0.0, %v2527_v36  ;;  %vm2515_vm9 = vcmp.ge.f32.partialorder %v5433_v30, 0.0 }
 0x9ae   : > { %v2542_v29 = vadd.f32 1.0, %v2534_v37  ;;  %v2538_v44 = vmul.f32 0.3275911, %v2530_v39  ;;  %3144 = vmatpush1.bf16.msra.mxu0 %v4244_v40  ;;  %v2638_v51 = vmul.f32 %v2630_v45, %v2526_v31  ;;  %v2634_v52 = vsub.f32 0.0, %v2530_v39  ;;  %v4267_v40 = vld [vmem:[%s5136_s14 + $0x1b4] ss:$8 sps:$4 sm:$0xff]  }
 0x9af   : > { %v2543_v42 = vadd.f32 1.0, %v2535_v38  ;;  %v2539_v48 = vmul.f32 0.3275911, %v2531_v43  ;;  %3145 = vmatprep.subr.bf16.mxu0 %v4249_v41  ;;  %v2639_v59 = vmul.f32 %v2631_v24, %v2527_v36  ;;  %v2635_v61 = vsub.f32 0.0, %v2531_v43  ;;  %v4262_v38 = vld [vmem:[%s5136_s14 + $0x1a0] ss:$8 sps:$4 sm:$0xff]  }
 0x9b0   : > { %4296 = vrcp.f32 %v2542_v29  ;;  %v2546_v46 = vadd.f32 1.0, %v2538_v44  ;;  %v2648_v0 = vmul.f32 1.442695, %v2638_v51  ;;  %v2642_v2 = vmul.f32 %v2634_v52, %v2530_v39  ;;  %v4276_v12 = vld [vmem:[%s5136_s14 + $0x1e4] ss:$8 sps:$4 sm:$0xff]  }
 0x9b1   : > { %4298 = vrcp.f32 %v2543_v42  ;;  %v2547_v21 = vadd.f32 1.0, %v2539_v48  ;;  %v2650_v4 = vmul.f32 1.442695, %v2639_v59  ;;  %v2643_v19 = vmul.f32 %v2635_v61, %v2531_v43  ;;  %v4265_v48 = vld [vmem:[%s5136_s14 + $0x1b0] ss:$8 sps:$4 sm:$0xff]  }
 0x9b2   : > { %4300 = vrcp.f32 %v2546_v46  ;;  %3146 = vmatpush1.bf16.msra.mxu0 %v4247_v49  ;;  %v2656_v11 = vmul.f32 1.442695, %v2642_v2  ;;  %v4268_v59 = vld [vmem:[%s5136_s14 + $0x1c0] ss:$8 sps:$4 sm:$0xff]   ;;  %v4273_v61 = vld [vmem:[%s5136_s14 + $0x1d4] ss:$8 sps:$4 sm:$0xff]  }
 0x9b3   : > { %4302 = vrcp.f32 %v2547_v21  ;;  %3147 = vmatprep.subr.bf16.mxu0 %v4252_v50  ;;  %v2658_v31 = vmul.f32 1.442695, %v2643_v19  ;;  %v4270_v21 = vld [vmem:[%s5136_s14 + $0x1c4] ss:$8 sps:$4 sm:$0xff]  }
 0x9b4   : > { %4304 = vpow2.f32 %v2648_v0 }
 0x9b5   : > { %4306 = vpow2.f32 %v2650_v4 }
 0x9b6   : > { %3148 = vmatpush1.bf16.msra.mxu0 %v4250_v53  ;;  %4308 = vpow2.f32 %v2656_v11  ;;  %v4279_v11 = vld [vmem:[%s5136_s14 + $0x1f4] ss:$8 sps:$4 sm:$0xff]  }
 0x9b7   : > { %3149 = vmatprep.subr.bf16.mxu0 %v4255_v55  ;;  %4310 = vpow2.f32 %v2658_v31 }
 0x9ba   : > { %v5442_v56 = vpop.eup %4296  ;;  %3150 = vmatpush1.bf16.msra.mxu0 %v4253_v54 }
 0x9bb   : > { %v4299_v27 = vpop.eup %4298  ;;  %v2558_v58 = vmul.f32 1.0614054, %v5442_v56  ;;  %3151 = vmatprep.subr.bf16.mxu0 %v4258_v57 }
 0x9bc   : > { %v2559_v60 = vmul.f32 1.0614054, %v4299_v27  ;;  %v5447_v63 = vpop.eup %4300 }
 0x9bd   : > { %v2566_v35 = vadd.f32 -1.4531521, %v2558_v58  ;;  %v2562_v5 = vmul.f32 1.0614054, %v5447_v63  ;;  %v5452_v6 = vpop.eup %4302 }
 0x9be   : > { %v2567_v1 = vadd.f32 -1.4531521, %v2559_v60  ;;  %v2563_v28 = vmul.f32 1.0614054, %v5452_v6  ;;  %3152 = vmatpush1.bf16.msra.mxu0 %v4256_v62  ;;  %v4305_v24 = vpop.eup %4304 }
 0x9bf   : > { %v2574_v17 = vmul.f32 %v5442_v56, %v2566_v35  ;;  %v2570_v8 = vadd.f32 -1.4531521, %v2562_v5  ;;  %3153 = vmatprep.subr.bf16.mxu0 %v4261_v3  ;;  %v4307_v51 = vpop.eup %4306  ;;  %v2519_v5 = vsel %vm2511_vm7, 1.0, %v4666_v47 }
 0x9c0   : > { %v2575_v22 = vmul.f32 %v4299_v27, %v2567_v1  ;;  %v2571_v23 = vadd.f32 -1.4531521, %v2563_v28  ;;  %v4309_v62 = vpop.eup %4308  ;;  %v2494_v28 = vmul.f32 0.5, %v5408_v13 }
 0x9c1   : > { %v2582_v25 = vadd.f32 1.4214138, %v2574_v17  ;;  %v2578_v16 = vmul.f32 %v5447_v63, %v2570_v8  ;;  %v4271_v17 = vld [vmem:[%s5136_s14 + $0x1d0] ss:$8 sps:$4 sm:$0xff]   ;;  %v4311_v4 = vpop.eup %4310 }
 0x9c2   : > { %v2583_v9 = vadd.f32 1.4214138, %v2575_v22  ;;  %v2579_v37 = vmul.f32 %v5452_v6, %v2571_v23  ;;  %3154 = vmatpush1.bf16.msra.mxu0 %v4259_v7  ;;  %v2522_v7 = vsel %vm2514_vm8, 1.0, %v4666_v47  ;;  %v2495_v23 = vmul.f32 0.5, %v5411_v10  ;;  %v2700_v10 = vld [vmem:[%s5138_s4] sm:$0xff] }
 0x9c3   : > { %v2590_v15 = vmul.f32 %v5442_v56, %v2582_v25  ;;  %v2586_v36 = vadd.f32 1.4214138, %v2578_v16  ;;  %3155 = vmatprep.subr.bf16.mxu0 %v4264_v14 }
 0x9c4   : > { %v2591_v26 = vmul.f32 %v4299_v27, %v2583_v9  ;;  %v2587_v42 = vadd.f32 1.4214138, %v2579_v37  ;;  %v2523_v9 = vsel %vm2515_vm9, 1.0, %v4666_v47  ;;  %v4277_v47 = vld [vmem:[%s5136_s14 + $0x1f0] ss:$8 sps:$4 sm:$0xff]  }
 0x9c5   : > { %v2598_v34 = vadd.f32 -0.28449672, %v2590_v15  ;;  %v2594_v41 = vmul.f32 %v5447_v63, %v2586_v36  ;;  %v2498_v15 = vmul.f32 0.5, %v5416_v20 }
 0x9c6   : > { %v2599_v39 = vadd.f32 -0.28449672, %v2591_v26  ;;  %v2595_v49 = vmul.f32 %v5452_v6, %v2587_v42  ;;  %3156 = vmatpush1.bf16.msra.mxu0 %v4262_v38  ;;  %v2703_v42 = vld [vmem:[%s5138_s4 + $0x18] sm:$0xff] }
 0x9c7   : > { %v2606_v29 = vmul.f32 %v5442_v56, %v2598_v34  ;;  %v2602_v46 = vadd.f32 -0.28449672, %v2594_v41  ;;  %3157 = vmatprep.subr.bf16.mxu0 %v4267_v40  ;;  %v2499_v34 = vmul.f32 0.5, %v5426_v33  ;;  %v2702_v33 = vld [vmem:[%s5138_s4 + $0x10] sm:$0xff] }
 0x9c8   : > { %v2607_v44 = vmul.f32 %v4299_v27, %v2599_v39  ;;  %v2603_v55 = vadd.f32 -0.28449672, %v2595_v49  ;;  %v2701_v39 = vld [vmem:[%s5138_s4 + $0x8] sm:$0xff] }
 0x9c9   : > { %v2614_v43 = vadd.f32 0.2548296, %v2606_v29  ;;  %v2610_v45 = vmul.f32 %v5447_v63, %v2602_v46 }
 0x9ca   : > { %v2615_v50 = vadd.f32 0.2548296, %v2607_v44  ;;  %v2611_v58 = vmul.f32 %v5452_v6, %v2603_v55  ;;  %3158 = vmatpush1.bf16.msra.mxu0 %v4265_v48 }
 0x9cb   : > { %v2622_v53 = vmul.f32 %v5442_v56, %v2614_v43  ;;  %v2618_v57 = vadd.f32 0.2548296, %v2610_v45  ;;  %3159 = vmatprep.subr.bf16.mxu0 %v4270_v21 }
 0x9cc   : > { %v2623_v54 = vmul.f32 %v4299_v27, %v2615_v50  ;;  %v2619_v27 = vadd.f32 0.2548296, %v2611_v58 }
 0x9cd   : > { %v2662_v52 = vmul.f32 %v4305_v24, %v2622_v53  ;;  %v2626_v56 = vmul.f32 %v5447_v63, %v2618_v57 }
 0x9ce   : > { %v2663_v60 = vmul.f32 %v4307_v51, %v2623_v54  ;;  %v2627_v3 = vmul.f32 %v5452_v6, %v2619_v27  ;;  %3160 = vmatpush1.bf16.msra.mxu0 %v4268_v59  ;;  %v4274_v6 = vld [vmem:[%s5136_s14 + $0x1e0] ss:$8 sps:$4 sm:$0xff]   ;;  %s3200_s14 = sshll.u32 %s5138_s4, 4  ;;  %s5503_s14 = int_to_ptr.vmem [resolvable:$true] %s3200_s14 }
 0x9cf   : > { %v2670_v35 = vsub.f32 1.0, %v2662_v52  ;;  %v2666_v2 = vmul.f32 %v4309_v62, %v2626_v56  ;;  %3161 = vmatprep.subr.bf16.mxu0 %v4273_v61  ;;  %s4514_s2 = scalar_lea.vmem %s5503_s14, 512  ;;  %p4521_p6 = scmp.lt.s32.totalorder %s5503_s14, %s4519_s22 }
 0x9d0   : > { %v2671_v0 = vsub.f32 1.0, %v2663_v60  ;;  %v2667_v19 = vmul.f32 %v4311_v4, %v2627_v3  ;;  %p4515_p1 = scmp.ne.s32.totalorder %s5503_s14, %s4514_s2  ;;  %p4522_p5 = scmp.lt.s32.totalorder %s4520_s5, %s4514_s2 }
 0x9d1   : > { %v2678_v1 = vmul.f32 %v2670_v35, %v2518_v18  ;;  %v2674_v22 = vsub.f32 1.0, %v2666_v2 }
 0x9d2   : > { %v2679_v63 = vmul.f32 %v2671_v0, %v2519_v5  ;;  %v2675_v8 = vsub.f32 1.0, %v2667_v19  ;;  %3162 = vmatpush1.bf16.msra.mxu0 %v4271_v17  ;;  %p4516_p7 = pnand %p4515_p1, %p5678_p3  ;;  %p4523_p0 = por %p4522_p5, %p4521_p6 }
 0x9d3   : > { %v2686_v32 = vadd.f32 1.0, %v2678_v1  ;;  %v2682_v25 = vmul.f32 %v2674_v22, %v2522_v7  ;;  %3163 = vmatprep.subr.bf16.mxu0 %v4276_v12 }
 0x9d4   : > { %v2687_v14 = vadd.f32 1.0, %v2679_v63  ;;  %v2683_v30 = vmul.f32 %v2675_v8, %v2523_v9  ;;  %p4517_p9 = pneg %p4516_p7 }
 0x9d5   : > { %v2690_v16 = vadd.f32 1.0, %v2682_v25  ;;  %v2694_v26 = vmul.f32 %v2686_v32, %v2494_v28 }
 0x9d6   : > { %v2691_v13 = vadd.f32 1.0, %v2683_v30  ;;  %3164 = vmatpush1.bf16.msra.mxu0 %v4274_v6  ;;  %v2695_v36 = vmul.f32 %v2687_v14, %v2495_v23  ;;  %p4524_p11 = pnand %p4523_p0, %p4517_p9 }
 0x9d7   : > { %v2698_v31 = vmul.f32 %v2690_v16, %v2498_v15  ;;  %3165 = vmatprep.subr.bf16.mxu0 %v4279_v11 }
 0x9d8   : > { %v2699_v37 = vmul.f32 %v2691_v13, %v2499_v34 }
 0x9d9   : > { %v2706_v20 = vpack.c.bf16 %v2698_v31, %v2694_v26 }
 0x9da   : > { %3166 = vmatpush1.bf16.msra.mxu0 %v4277_v47  ;;  %v2707_v38 = vpack.c.bf16 %v2699_v37, %v2695_v36 }
 0x9dc   : > { %3167 = vmatprep.mubr.bf16.mxu0 %v2707_v38 }
 0x9dd   : > { %3168 = vmatmul.mubr.bf16.vlgmr.msra.gmra.mrb[0].mxu0 %v2706_v20 }
 0xab0   : > { %v3169_v40 = vpop.f32.mrb[0].mxu0 }
 0xab1   : > { %v3178_v29 = vadd.f32 %v3169_v40, %v2700_v10  ;;  %v3171_v41 = vpop.f32.mrb[1].mxu0 }
 0xab2   : > { %v3179_v44 = vadd.f32 %v3171_v41, %v2701_v39  ;;  %v3173_v43 = vpop.f32.mrb[2].mxu0 }
 0xab3   : > { %3182 = vst [vmem:[%s5138_s4] sm:$0xff] %v3178_v29  ;;  %v3180_v46 = vadd.f32 %v3173_v43, %v2702_v33  ;;  %v3175_v49 = vpop.f32.mrb[3].mxu0 }
 0xab4   : > { %3183 = vst [vmem:[%s5138_s4 + $0x8] sm:$0xff] %v3179_v44  ;;  %v3181_v48 = vadd.f32 %v3175_v49, %v2703_v42 }
 0xab5   : > { %3184 = vst [vmem:[%s5138_s4 + $0x10] sm:$0xff] %v3180_v46 }
 0xab6   : > { %3185 = vst [vmem:[%s5138_s4 + $0x18] sm:$0xff] %v3181_v48 }
 0xab7   : > { %4527 = shalt.err (!%p4524_p11)
}
 0xab8   : > { %s4528_s4 = scalar_lea.hbm %s5501_s15, 512  ;;  %s4532_s25 = scalar_lea.hbm %s5677_s9, 1024 }
 0xab9   : > { %p4529_p12 = scmp.ne.s32.totalorder %s5501_s15, %s4528_s4  ;;  %p4533_p4 = scmp.lt.u32.totalorder %s5501_s15, %s5677_s9 }
 0xaba   : > { %p4534_p13 = scmp.lt.u32.totalorder %s4532_s25, %s4528_s4  ;;  %p4536_p1 = scmp.lt.u32.totalorder %s4528_s4, %s5501_s15 }
 0xabb   : > { %p4530_p10 = pnand %p4529_p12, %p5678_p3 }
 0xabc   : > { %p4535_p8 = por %p4534_p13, %p4533_p4 }
 0xabd   : > { %p4531_p2 = pneg %p4530_p10 }
 0xabe   : > { %p4537_p7 = por %p4536_p1, %p4535_p8 }
 0xac0   : > { %p4538_p9 = pnand %p4537_p7, %p4531_p2 }
 0xac2   : > { %4541 = shalt.err (!%p4538_p9)
}
 0xac3   : > { %s4668_s26 = smov 256   ;;  %s4669_s20 = smov 16  }
 0xac4   : > { %3725 = dma.vmem_to_hbm [thread:$0]  (%p5678_p3), %s5503_s14, 512, %s5501_s15, %s3187_s1, %s4668_s26, %s4668_s26, %s4669_s20  }
 0xac5 PF: > { %p3763_p6 = scmp.ge.s32.totalorder %s4648_s18, 2  ;;  %s3215_s8 = sand.u32 1, %s4620_s28  }
 0xac6   : > { %p5679_p5 = scmp.ne.s32.totalorder %s5648_s12, 0  ;;  %s3216_s24 = scalar_lea.sflag [#allocation6], %s3215_s8 }
 0xac8   : > { %p3751_p0 = pnand %p3763_p6, %p5679_p5 }
 0xaca   : > { %4603 = dma.done.wait (!%p3751_p0), %s3216_s24, 512  }
 0xacb   : > { %4605 = vsyncadd (!%p3751_p0), %s3216_s24, 4294966784  ;;  %s34_s18 = sadd.s32 1, %s4648_s18   ;;  %s5680_s25 = sld [smem:[#allocation22_spill]] }
 0xacc   : > { %p31_p11 = scmp.ge.s32.totalorder %s34_s18, 6   ;;  %s5681_s26 = sld [smem:[#allocation23_spill]] }
 0xacd   : > { %s5682_s2 = sld [smem:[#allocation29_spill]]  ;;  %s5683_s23 = smov %s5022_s27 }
 0xace   : > { %s5684_s21 = sld [smem:[#allocation28_spill]]  ;;  %s5686_s28 = smov %s4624_s29 }
 0xacf   : > { %s5687_s29 = smov %s4628_s30  ;;  %s5688_s30 = smov %s5683_s23 }
 0xad0   : > { %s5689_s14 = smov %s4640_s16  ;;  %s5690_s15 = smov %s4644_s17 }
 0xad1   : > { %s5692_s17 = smov %s5698_s3  ;;  %33 = sbr.rel (!%p31_p11) target bundleno = 26 (0x1a), region = 162 }
 0xad3   : > { %s5685_s27 = smov %s5682_s2 }
 0xad4   : > { %s5691_s16 = smov %s5684_s21 }
 0xad8   :  { %3221 = vsyncpa [#allocation5], 1 }
 0xad9   :  { %3223 = vsyncpa [#allocation5 + $0x1], 1 }
 0xada   :  { %3224 = vsyncpa [#allocation8], 1 }
 0xadb   :  { %3225 = vsyncpa [#allocation11], 1 }
 0xadc   :  { %3226 = vsyncpa [#allocation14], 1 }
 0xadd   :  { %3228 = vsyncpa [#allocation14 + $0x1], 1 }
 0xade   :  { %3229 = vsyncpa [#allocation6], 1 }
 0xadf   :  { %3231 = vsyncpa [#allocation6 + $0x1], 1 }

</bundles_post_ra>
